<compile_context>
chip_gen: v6e
topology: v6e:2x2x1
jax: 0.10.0
libtpu: 0.0.40
codegen_flags: <defaults>
</compile_context>

<pallas_src>
import jax
import jax.numpy as jnp
import numpy as np
from jax.experimental import pallas as pl
from jax.experimental.pallas import tpu as pltpu


# ---------------------------------------------------------------------------
# Gating (top_k_gating, gate_type='mlp') — plain JAX; XLA fuses MLP+softmax+top_k.
# ---------------------------------------------------------------------------
def compute_gates(x_flat, params, top_k):
    h = jax.nn.gelu(x_flat @ params["wg1"] + params["bg1"], approximate=True)
    logits = h @ params["wg2"]
    probs = jax.nn.softmax(logits, axis=-1)
    top_k_gates, top_k_indices = jax.lax.top_k(probs, top_k)
    # TODO(synk): exact top_k_gating normalization is not shown in the reference;
    # using the common "renormalize selected probabilities" variant.
    top_k_gates = top_k_gates / (jnp.sum(top_k_gates, axis=-1, keepdims=True) + 1e-6)
    N, E = probs.shape
    gate_dense = (
        jnp.zeros((N, E), jnp.float32)
        .at[jnp.arange(N)[:, None], top_k_indices]
        .add(top_k_gates.astype(jnp.float32))
    )
    return gate_dense, probs


# ---------------------------------------------------------------------------
# Pallas kernel: expert FFNs + gated combine.
#   grid = (token_tiles, experts); output block resident across the expert axis
#   (accumulator pattern). Expert weights fully VMEM-resident (constant index_map).
#   A scalar-prefetched (tile, expert) mask skips experts with no selected tokens.
# ---------------------------------------------------------------------------
def moe_experts_kernel(mask_ref, x_ref, g_ref, w1_ref, w2_ref, o_ref, acc_ref):
    i = pl.program_id(0)   # token tile (parallel)
    e = pl.program_id(1)   # expert    (reduction axis, innermost)

    @pl.when(e == 0)
    def _init():
        acc_ref[...] = jnp.zeros_like(acc_ref)

    @pl.when(mask_ref[i, e] > 0)
    def _compute():
        # select expert e's gate column (tm, 1) without a lane-dynamic slice
        g_all = g_ref[...]                                            # (tm, E) f32
        lane = jax.lax.broadcasted_iota(jnp.int32, g_all.shape, 1)
        g_col = jnp.sum(jnp.where(lane == e, g_all, 0.0), axis=1, keepdims=True)

        h = jnp.dot(x_ref[...], w1_ref[e], preferred_element_type=jnp.float32)
        # TODO(synk): the module takes `activation` as a constructor argument;
        # tanh-approx GELU is used here (and in the reference check).
        h = jax.nn.gelu(h, approximate=True)
        # fold the gate into h before the second matmul (H-wide mul feeds the MXU;
        # gate==0 rows contribute exactly zero, matching the top-k scatter-add)
        h = (h * g_col).astype(w2_ref.dtype)
        acc_ref[...] += jnp.dot(h, w2_ref[e], preferred_element_type=jnp.float32)

    @pl.when(e == pl.num_programs(1) - 1)
    def _finalize():
        o_ref[...] = acc_ref[...].astype(o_ref.dtype)


def _expert_vmem_budget_bytes(tm, D, H, E):
    wb = 2 * 2 * E * D * H * 2       # w1 + w2 (bf16), x2 in case the pipeline buffers them
    xb = 2 * tm * D * 2              # x tile (bf16), double-buffered
    gb = 2 * tm * 128 * 4            # gate tile (f32, lane-padded), double-buffered
    ob = 2 * tm * D * 4              # output tile (f32), double-buffered
    ab = tm * D * 4                  # f32 accumulator scratch
    return wb + xb + gb + ob + ab


def moe_experts(x_flat, gate_dense, w1, w2, *, tm, out_dtype=jnp.float32):
    N, D = x_flat.shape
    E, _, H = w1.shape
    assert N % tm == 0, "caller must pad N to a multiple of tm"
    n_tiles = N // tm

    budget = _expert_vmem_budget_bytes(tm, D, H, E)
    if budget > 56 * 1024 * 1024:
        # TODO(synk): for experts too large to keep resident in v7x's 64 MiB VMEM,
        # add an 'arbitrary' H-tiling grid axis instead of full weight residency.
        raise ValueError("expert weights too large for the resident-VMEM layout")
    vmem_limit = int(min(max(budget + (8 << 20), 32 << 20), 64 << 20))

    # hot-path dtypes: bf16 operands, f32 accumulation
    x_bf = x_flat.astype(jnp.bfloat16)
    w1_bf = w1.astype(jnp.bfloat16)
    w2_bf = w2.astype(jnp.bfloat16)
    g_f32 = gate_dense.astype(jnp.float32)

    # (token_tile, expert) activity mask -> SMEM via scalar prefetch
    tile_mask = (g_f32.reshape(n_tiles, tm, E) > 0).any(axis=1).astype(jnp.int32)

    return pl.pallas_call(
        moe_experts_kernel,
        out_shape=jax.ShapeDtypeStruct((N, D), out_dtype),
        grid_spec=pltpu.PrefetchScalarGridSpec(
            num_scalar_prefetch=1,
            grid=(n_tiles, E),
            in_specs=[
                pl.BlockSpec((tm, D), lambda i, e, m: (i, 0)),       # x tile
                pl.BlockSpec((tm, E), lambda i, e, m: (i, 0)),       # gate tile
                pl.BlockSpec((E, D, H), lambda i, e, m: (0, 0, 0)),  # w1: resident
                pl.BlockSpec((E, H, D), lambda i, e, m: (0, 0, 0)),  # w2: resident
            ],
            out_specs=pl.BlockSpec((tm, D), lambda i, e, m: (i, 0)),
            scratch_shapes=[pltpu.VMEM((tm, D), jnp.float32)],
        ),
        compiler_params=pltpu.CompilerParams(
            dimension_semantics=("parallel", "arbitrary"),
            vmem_limit_bytes=vmem_limit,
        ),
    )(tile_mask, x_bf, g_f32, w1_bf, w2_bf)


# ---------------------------------------------------------------------------
# Full MoE.forward
# ---------------------------------------------------------------------------
def moe_forward(x, params, *, top_k, tm=256):
    bsz, length, D = x.shape
    N = bsz * length
    x_flat = x.reshape(N, D)

    # gating (tiny; left to XLA)
    gate_dense, probs = compute_gates(x_flat, params, top_k)

    # token tiling: keep tm <= N, a multiple of 8, and pad N up to a multiple of tm.
    # (For megacore / v7x, choose shapes with N // tm >= 2 so the parallel axis splits.)
    tm_eff = max(8, (min(tm, N) // 8) * 8)
    n_pad = (-N) % tm_eff
    if n_pad:
        x_p = jnp.pad(x_flat, ((0, n_pad), (0, 0)))
        g_p = jnp.pad(gate_dense, ((0, n_pad), (0, 0)))
    else:
        x_p, g_p = x_flat, gate_dense

    y_p = moe_experts(x_p, g_p, params["w1"], params["w2"], tm=tm_eff,
                      out_dtype=x.dtype)
    y_flat = y_p[:N]

    # aux_loss='mi' (negative mutual information between tokens and experts)
    # TODO(synk): top_k_gating internals not shown; this is the standard MI aux loss.
    eps = 1e-9
    p_mean = probs.mean(axis=0)
    h_of_mean = -jnp.sum(p_mean * jnp.log(p_mean + eps))
    mean_of_h = -jnp.mean(jnp.sum(probs * jnp.log(probs + eps), axis=-1))
    loss = -h_of_mean + mean_of_h

    return y_flat.reshape(bsz, length, D), loss


# pure-JAX reference for the expert hot path (same bf16/f32-acc numerics)
def ref_dense_moe(x_flat, gate_dense, w1, w2):
    xb = x_flat.astype(jnp.bfloat16)
    w1b = w1.astype(jnp.bfloat16)
    w2b = w2.astype(jnp.bfloat16)
    h = jnp.einsum("nd,edh->enh", xb, w1b, preferred_element_type=jnp.float32)
    h = jax.nn.gelu(h, approximate=True)
    h = (h * gate_dense.T[:, :, None].astype(jnp.float32)).astype(jnp.bfloat16)
    out = jnp.einsum("enh,ehd->end", h, w2b, preferred_element_type=jnp.float32)
    return out.sum(axis=0)


if __name__ == "__main__":
    # small shapes consistent with the module (2 token tiles -> parallel axis splits)
    bsz, length = 2, 256
    input_size, head_size = 128, 128
    num_experts, top_k, gating_size = 4, 2, 256
    tm = 256

    key = jax.random.PRNGKey(0)
    k_x, k_w1, k_w2, k_g1, k_g2 = jax.random.split(key, 5)

    x = jax.random.normal(k_x, (bsz, length, input_size), dtype=jnp.float32)
    params = {
        # ParallelExperts(num_experts, input_size, head_size), bias=False
        "w1": 0.05 * jax.random.normal(k_w1, (num_experts, input_size, head_size), jnp.float32),
        # ParallelExperts(num_experts, head_size, input_size), bias=False
        "w2": 0.05 * jax.random.normal(k_w2, (num_experts, head_size, input_size), jnp.float32),
        # gate MLP: Linear(input_size, gating_size) -> gelu -> Linear(gating_size, num_experts, bias=False)
        "wg1": 0.05 * jax.random.normal(k_g1, (input_size, gating_size), jnp.float32),
        "bg1": jnp.zeros((1, gating_size), jnp.float32),
        "wg2": 0.05 * jax.random.normal(k_g2, (gating_size, num_experts), jnp.float32),
    }

    y, loss = moe_forward(x, params, top_k=top_k, tm=tm)
    y = jax.block_until_ready(y)
    loss = jax.block_until_ready(loss)

    # correctness check of the Pallas expert path against a pure-JAX reference
    x_flat = x.reshape(-1, input_size)
    gate_dense, _ = compute_gates(x_flat, params, top_k)
    y_ref = ref_dense_moe(x_flat, gate_dense, params["w1"], params["w2"]).reshape(y.shape)
    np.testing.assert_allclose(np.asarray(y), np.asarray(y_ref), atol=1e-2, rtol=1e-2)

    assert y.shape == (bsz, length, input_size)
    assert bool(jnp.isfinite(loss))
    print("KERNEL_OK")
</pallas_src>

<mosaic_0001>
module attributes {stable_mosaic.version = 11 : i64} {
  func.func @moe_experts_kernel(%arg0: i32, %arg1: i32, %arg2: memref<2x4xi32, #tpu.memory_space<smem>>, %arg3: memref<256x128xbf16, #tpu.memory_space<vmem>>, %arg4: memref<256x4xf32, #tpu.memory_space<vmem>>, %arg5: memref<4x128x128xbf16, #tpu.memory_space<vmem>>, %arg6: memref<4x128x128xbf16, #tpu.memory_space<vmem>>, %arg7: memref<256x128xf32, #tpu.memory_space<vmem>>, %arg8: memref<256x128xf32, #tpu.memory_space<vmem>>) attributes {dimension_semantics = [#tpu.dimension_semantics<parallel>, #tpu.dimension_semantics<arbitrary>], iteration_bounds = array<i64: 2, 4>, scalar_prefetch = 1 : i64, scratch_operands = 1 : i64, tpu.core_type = #tpu.core_type<tc>, window_params = [{transform_indices = @transform_0, window_bounds = array<i64: 256, 128>}, {transform_indices = @transform_1, window_bounds = array<i64: 256, 4>}, {pipeline_mode = #tpu.pipeline_mode<synchronous>, transform_indices = @transform_2, window_bounds = array<i64: 4, 128, 128>}, {pipeline_mode = #tpu.pipeline_mode<synchronous>, transform_indices = @transform_3, window_bounds = array<i64: 4, 128, 128>}, {transform_indices = @transform_4, window_bounds = array<i64: 256, 128>}]} {
    %c0_i32 = arith.constant 0 : i32
    %0 = arith.cmpi eq, %arg1, %c0_i32 : i32
    %1 = arith.extui %0 : i1 to i32
    %c0_i32_0 = arith.constant 0 : i32
    %2 = arith.cmpi ne, %1, %c0_i32_0 : i32
    scf.if %2 {
      %cst = arith.constant 0.000000e+00 : f32
      %12 = vector.broadcast %cst : f32 to vector<256x128xf32>
      %c0 = arith.constant 0 : index
      %c0_4 = arith.constant 0 : index
      %13 = vector.load %arg8[%c0, %c0_4] : memref<256x128xf32, #tpu.memory_space<vmem>>, vector<256x128xf32>
      tpu.vector_store %arg8[%c0, %c0_4], %12 {strides = array<i32>} : memref<256x128xf32, #tpu.memory_space<vmem>>, vector<256x128xf32>,
    } else {
    }
    %3 = arith.index_cast %arg0 : i32 to index
    %4 = arith.index_cast %arg1 : i32 to index
    %5 = memref.load %arg2[%3, %4] : memref<2x4xi32, #tpu.memory_space<smem>>
    %c0_i32_1 = arith.constant 0 : i32
    %6 = arith.cmpi sgt, %5, %c0_i32_1 : i32
    %7 = arith.extui %6 : i1 to i32
    %c0_i32_2 = arith.constant 0 : i32
    %8 = arith.cmpi ne, %7, %c0_i32_2 : i32
    scf.if %8 {
      %c0 = arith.constant 0 : index
      %c0_4 = arith.constant 0 : index
      %12 = vector.load %arg4[%c0, %c0_4] : memref<256x4xf32, #tpu.memory_space<vmem>>, vector<256x4xf32>
      %13 = tpu.iota {dimensions = array<i32: 1>} : vector<256x4xi32>
      %14 = vector.broadcast %arg1 : i32 to vector<256x4xi32>
      %15 = arith.cmpi eq, %13, %14 : vector<256x4xi32>
      %cst = arith.constant 0.000000e+00 : f32
      %16 = vector.broadcast %cst : f32 to vector<256x4xf32>
      %17 = arith.select %15, %12, %16 : vector<256x4xi1>, vector<256x4xf32>
      %cst_5 = arith.constant dense<0.000000e+00> : vector<256xf32>
      %18 = vector.multi_reduction <add>, %17, %cst_5 [1] : vector<256x4xf32> to vector<256xf32>
      %19 = vector.shape_cast %18 : vector<256xf32> to vector<256x1xf32>
      %c0_6 = arith.constant 0 : index
      %c0_7 = arith.constant 0 : index
      %20 = vector.load %arg3[%c0_6, %c0_7] : memref<256x128xbf16, #tpu.memory_space<vmem>>, vector<256x128xbf16>
      %21 = arith.index_cast %arg1 : i32 to index
      %c0_8 = arith.constant 0 : index
      %c0_9 = arith.constant 0 : index
      %22 = vector.load %arg5[%21, %c0_8, %c0_9] : memref<4x128x128xbf16, #tpu.memory_space<vmem>>, vector<1x128x128xbf16>
      %23 = vector.shape_cast %22 : vector<1x128x128xbf16> to vector<128x128xbf16>
      %cst_10 = arith.constant dense<0.000000e+00> : vector<256x128xf32>
      %24 = tpu.matmul %20, %23, %cst_10 {dimension_numbers = #tpu.dot_dimension_numbers<[1], [0], [0], [1], [0, 0, 1, 1], [], []>} : vector<256x128xbf16>, vector<128x128xbf16>, vector<256x128xf32> -> vector<256x128xf32>
      %25 = arith.mulf %24, %24 : vector<256x128xf32>
      %26 = arith.mulf %24, %25 : vector<256x128xf32>
      %cst_11 = arith.constant 4.471500e-02 : f32
      %27 = vector.broadcast %cst_11 : f32 to vector<256x128xf32>
      %28 = arith.mulf %27, %26 : vector<256x128xf32>
      %29 = arith.addf %24, %28 : vector<256x128xf32>
      %cst_12 = arith.constant 0.797884583 : f32
      %30 = vector.broadcast %cst_12 : f32 to vector<256x128xf32>
      %31 = arith.mulf %30, %29 : vector<256x128xf32>
      %32 = math.tanh %31 : vector<256x128xf32>
      %cst_13 = arith.constant 1.000000e+00 : f32
      %33 = vector.broadcast %cst_13 : f32 to vector<256x128xf32>
      %34 = arith.addf %33, %32 : vector<256x128xf32>
      %cst_14 = arith.constant 5.000000e-01 : f32
      %35 = vector.broadcast %cst_14 : f32 to vector<256x128xf32>
      %36 = arith.mulf %35, %34 : vector<256x128xf32>
      %37 = arith.mulf %24, %36 : vector<256x128xf32>
      %38 = vector.broadcast %19 : vector<256x1xf32> to vector<256x128xf32>
      %39 = arith.mulf %37, %38 : vector<256x128xf32>
      %40 = arith.truncf %39 : vector<256x128xf32> to vector<256x128xbf16>
      %c0_15 = arith.constant 0 : index
      %c0_16 = arith.constant 0 : index
      %41 = vector.load %arg8[%c0_15, %c0_16] : memref<256x128xf32, #tpu.memory_space<vmem>>, vector<256x128xf32>
      %42 = arith.index_cast %arg1 : i32 to index
      %c0_17 = arith.constant 0 : index
      %c0_18 = arith.constant 0 : index
      %43 = vector.load %arg6[%42, %c0_17, %c0_18] : memref<4x128x128xbf16, #tpu.memory_space<vmem>>, vector<1x128x128xbf16>
      %44 = vector.shape_cast %43 : vector<1x128x128xbf16> to vector<128x128xbf16>
      %cst_19 = arith.constant dense<0.000000e+00> : vector<256x128xf32>
      %45 = tpu.matmul %40, %44, %cst_19 {dimension_numbers = #tpu.dot_dimension_numbers<[1], [0], [0], [1], [0, 0, 1, 1], [], []>} : vector<256x128xbf16>, vector<128x128xbf16>, vector<256x128xf32> -> vector<256x128xf32>
      %46 = arith.addf %41, %45 : vector<256x128xf32>
      %c0_20 = arith.constant 0 : index
      %c0_21 = arith.constant 0 : index
      %47 = vector.load %arg8[%c0_20, %c0_21] : memref<256x128xf32, #tpu.memory_space<vmem>>, vector<256x128xf32>
      tpu.vector_store %arg8[%c0_20, %c0_21], %46 {strides = array<i32>} : memref<256x128xf32, #tpu.memory_space<vmem>>, vector<256x128xf32>,
    } else {
    }
    %c3_i32 = arith.constant 3 : i32
    %9 = arith.cmpi eq, %arg1, %c3_i32 : i32
    %10 = arith.extui %9 : i1 to i32
    %c0_i32_3 = arith.constant 0 : i32
    %11 = arith.cmpi ne, %10, %c0_i32_3 : i32
    scf.if %11 {
      %c0 = arith.constant 0 : index
      %c0_4 = arith.constant 0 : index
      %12 = vector.load %arg8[%c0, %c0_4] : memref<256x128xf32, #tpu.memory_space<vmem>>, vector<256x128xf32>
      %c0_5 = arith.constant 0 : index
      %c0_6 = arith.constant 0 : index
      %13 = vector.load %arg7[%c0_5, %c0_6] : memref<256x128xf32, #tpu.memory_space<vmem>>, vector<256x128xf32>
      tpu.vector_store %arg7[%c0_5, %c0_6], %12 {strides = array<i32>} : memref<256x128xf32, #tpu.memory_space<vmem>>, vector<256x128xf32>,
    } else {
    }
    return
  }
  func.func @transform_0(%arg0: i32, %arg1: i32, %arg2: memref<2x4xi32, #tpu.memory_space<smem>>) -> (i32, i32) {
    %c0_i32 = arith.constant 0 : i32
    %c0_i32_0 = arith.constant 0 : i32
    return %arg0, %c0_i32 : i32, i32
  }
  func.func @transform_1(%arg0: i32, %arg1: i32, %arg2: memref<2x4xi32, #tpu.memory_space<smem>>) -> (i32, i32) {
    %c0_i32 = arith.constant 0 : i32
    %c0_i32_0 = arith.constant 0 : i32
    return %arg0, %c0_i32 : i32, i32
  }
  func.func @transform_2(%arg0: i32, %arg1: i32, %arg2: memref<2x4xi32, #tpu.memory_space<smem>>) -> (i32, i32, i32) {
    %c0_i32 = arith.constant 0 : i32
    %c0_i32_0 = arith.constant 0 : i32
    %c0_i32_1 = arith.constant 0 : i32
    %c0_i32_2 = arith.constant 0 : i32
    return %c0_i32, %c0_i32_0, %c0_i32_1 : i32, i32, i32
  }
  func.func @transform_3(%arg0: i32, %arg1: i32, %arg2: memref<2x4xi32, #tpu.memory_space<smem>>) -> (i32, i32, i32) {
    %c0_i32 = arith.constant 0 : i32
    %c0_i32_0 = arith.constant 0 : i32
    %c0_i32_1 = arith.constant 0 : i32
    %c0_i32_2 = arith.constant 0 : i32
    return %c0_i32, %c0_i32_0, %c0_i32_1 : i32, i32, i32
  }
  func.func @transform_4(%arg0: i32, %arg1: i32, %arg2: memref<2x4xi32, #tpu.memory_space<smem>>) -> (i32, i32) {
    %c0_i32 = arith.constant 0 : i32
    %c0_i32_0 = arith.constant 0 : i32
    return %arg0, %c0_i32 : i32, i32
  }
}

</mosaic_0001>

<bundles_post_ra>
// kernel: tpu_custom_call.1
= control target key start
LH: loop header
LB: loop body
LE: loop exit
PB: predicated region body
PF: predicated region fallthrough
CT: control target
= control target key end

     0   :  { %s2924_s0 = inlined_call_operand.vmem [shape: s32[2,4], index: 0, kind: input, shape index: {}]   ;;  %s2925_s1 = inlined_call_operand.vmem [shape: bf16[512,128], index: 1, kind: input, shape index: {}]   ;;  %s2926_s2 = inlined_call_operand.vmem [shape: f32[512,4], index: 2, kind: input, shape index: {}]   ;;  %s2927_s3 = inlined_call_operand.vmem [shape: bf16[4,128,128], index: 3, kind: input, shape index: {}]   ;;  %s2928_s4 = inlined_call_operand.hbm [shape: bf16[4,128,128], index: 4, kind: input, shape index: {}]   ;;  %s2929_s5 = inlined_call_operand.hbm [shape: f32[512,128], index: 5, kind: output, shape index: {}]  }
   0x1   :  { %s10_s20 = sshll.u32 %s2924_s0, 4  ;;  %s11_s20 = int_to_ptr.vmem [resolvable:$true] %s10_s20 }
   0x2   :  { %s2054_s21 = scalar_lea.vmem %s11_s20, 32  ;;  %p2059_p1 = scmp.lt.s32.totalorder %s11_s20, %s11_s20 }
   0x3   :  { %p2055_p0 = scmp.ne.s32.totalorder %s11_s20, %s2054_s21  ;;  %p2060_p2 = scmp.lt.s32.totalorder %s2054_s21, %s2054_s21 }
   0x5   :  { %p2061_p3 = por %p2060_p2, %p2059_p1 }
   0x7   :  { %p2062_p4 = pnand %p2061_p3, %p2055_p0 }
   0x9   :  { %2065 = shalt.err (!%p2062_p4)  }
   0xa   :  { %s2192_s22 = smov [#allocation4]  }
   0xb   :  { %13 = dma.vmem_to_smem %s11_s20, 32, %s2192_s22, [#allocation3] }
   0xc   :  { %2150 = dma.done.wait [#allocation3], 32 }
   0xd   :  { %2151 = vsyncadd [#allocation3], 4294967264 }
   0xe   :  { %15 = sfence }
   0xf   :  { %16 = vsyncpa [#allocation6], 0 }
  0x10   :  { %17 = vsyncpa [#allocation7], 0 }
  0x11   :  { %19 = vsyncpa [#allocation7 + $0x1], 0  ;;  %s2233_s23 = smov 0   ;;  %s2235_s24 = smov 0  }
  0x12   :  { %s2237_s0 = smov 0   ;;  %s2239_s25 = smov 0  }
  0x13   :  { %s2241_s26 = smov 0   ;;  %s2243_s27 = smov 0  }
  0x14   :  { %s2245_s28 = smov 0   ;;  %s2247_s29 = smov 0  }
  0x15 LB: > { %s1667_s30 = sadd.s32 4294967295, %s2190_s29   ;;  %s1668_s6 = sadd.s32 4294967294, %s2190_s29   ;;  %s2190_s29 = sphi %s2247_s29, %s25_s29   ;;  %s2186_s28 = sphi %s2245_s28, %s2945_s28   ;;  %s2182_s27 = sphi %s2243_s27, %s2944_s27   ;;  %s2178_s26 = sphi %s2241_s26, %s2943_s26   ;;  %s2174_s25 = sphi %s2239_s25, %s2942_s25   ;;  %s2170_s0 = sphi %s2237_s0, %s2941_s0   ;;  %s2166_s24 = sphi %s2235_s24, %s2940_s24   ;;  %s2162_s23 = sphi %s2233_s23, %s2939_s23  }
  0x16   : > { %s34_s7 = sadd.s32 1, %s2182_s27  ;;  %s37_s8 = sadd.s32 1, %s2186_s28 }
  0x17   : > { %p35_p5 = scmp.ge.s32.totalorder %s34_s7, 4  ;;  %s138_s9 = sadd.s32 1, %s2170_s0 }
  0x18   : > { %p148_p6 = scmp.ne.s32.totalorder %s2170_s0, %s2166_s24  ;;  %p149_p7 = scmp.eq.s32.totalorder %s1667_s30, 7 }
  0x19   : > { %s2947_s7 = smov (%p35_p5, %s34_s7), 0  ;;  %s2949_s8 = smov (!%p35_p5, %s37_s8), %s2186_s28 }
  0x1a   : > { %p2283_p8 = por %p149_p7, %p148_p6  ;;  %p154_p9 = scmp.ne.s32.totalorder %s2166_s24, %s2162_s23 }
  0x1b   : > { %p39_p10 = scmp.ge.s32.totalorder %s2949_s8, 2  ;;  %p155_p11 = scmp.eq.s32.totalorder %s1668_s6, 7 }
  0x1c   : > { %p1669_p12 = scmp.ge.s32.totalorder %s2190_s29, 1  ;;  %p162_p13 = scmp.lt.s32.totalorder %s2190_s29, 9 }
  0x1d   : > { %s2951_s8 = smov (%p39_p10, %s2949_s8), 0  ;;  %p2293_p0 = por %p155_p11, %p154_p9 }
  0x1e   : > { %p2297_p1 = pnand %p1669_p12, %p162_p13  ;;  %s135_s13 = ssub.s32 %s2186_s28, %s2951_s8 }
  0x1f   : > { %p136_p2 = scmp.eq.s32.totalorder %s135_s13, 0  ;;  %p2305_p4 = scmp.eq.s32.totalorder %s1667_s30, 0 }
  0x20   : > { %p1876_p3 = pneg %p2297_p1  ;;  %s2193_s16 = smov [#allocation5]  }
  0x21   : > { %s2310_s15 = scalar_select %p136_p2, %s2170_s0, %s138_s9  }
  0x22   : > { %s177_s17 = sshll.u32 %s2193_s16, 4  ;;  %p2314_p5 = pnand %p2305_p4, %p1876_p3  ;;  %s178_s17 = int_to_ptr.vmem [resolvable:$true] %s177_s17 }
  0x23   : > { %s2077_s19 = scalar_lea.vmem %s178_s17, 4096  ;;  %p2085_p11 = scmp.lt.s32.totalorder %s178_s17, %s178_s17 }
  0x24   : > { %p2068_p6 = pneg %p2314_p5  ;;  %p2078_p7 = scmp.ne.s32.totalorder %s178_s17, %s2077_s19 }
  0x25   : > { %p2086_p12 = scmp.lt.s32.totalorder %s2077_s19, %s2077_s19 }
  0x26   : > { %p2080_p9 = pnand %p2078_p7, %p2068_p6 }
  0x27   : > { %p2087_p13 = por %p2086_p12, %p2085_p11 }
  0x28   : > { %p2081_p10 = pneg %p2080_p9 }
  0x2a   : > { %p2088_p2 = pnand %p2087_p13, %p2081_p10 }
  0x2c   : > { %2091 = shalt.err (!%p2088_p2)
}
  0x2d   : > { %s2194_s20 = smov 64   ;;  %s2195_s21 = smov 4  }
  0x2e   : > { %1879 = dma.hbm_to_vmem [thread:$0]  (!%p2314_p5), %s2928_s4, 4096, %s178_s17, [#allocation6], %s2194_s20, %s2194_s20, %s2195_s21  }
  0x2f   : > { %211 = sbr.rel (%p2297_p1) target bundleno = 685 (0x2ad), region = 36 }
  0x34   : > { %2153 = dma.done.wait (%p2305_p4), [#allocation6], 4096  }
  0x35   : > { %2155 = vsyncadd (%p2305_p4), [#allocation6], 4294963200  ;;  %s2930_s6 = sand.u32 1, %s2166_s24   ;;  %s1675_s9 = sshll.u32 %s2178_s26, 5 }
  0x36   : > { %s1674_s13 = sshll.u32 %s2930_s6, 8  ;;  %p243_p3 = scmp.lt.s32.totalorder %s1675_s9, 63 }
  0x37   : > { %s2345_s22 = scalar_lea.vmem [#allocation8], %s1674_s13  ;;  %p1679_p1 = scmp.ne.s32.totalorder %s2174_s25, 0 }
  0x38   : > { %s2953_s9 = smov (!%p243_p3, %s1675_s9), 63 }
  0x39   : > { %s1676_s16 = sshll.u32 %s2953_s9, 2  ;;  %s1678_s17 = sshll.u32 %s2953_s9, 3 }
  0x3a   : > { %s2338_s19 = scalar_lea.vmem %s2925_s1, %s1676_s16  ;;  %s2343_s14 = scalar_lea.vmem %s2926_s2, %s1678_s17 }
  0x3b   : > { %259 = sbr.rel (%p1679_p1) target bundleno = 81 (0x51), region = 44 }
  0x40   : > { %v2196_v0 = vmov 0.0  }
  0x41   : > { %260 = vst [vmem:[#allocation2 + $0xb0] sm:$0xff] %v2196_v0  ;;  %261 = vst [vmem:[#allocation2] sm:$0xff] %v2196_v0 }
  0x42   : > { %262 = vst [vmem:[#allocation2 + $0xd8] sm:$0xff] %v2196_v0  ;;  %263 = vst [vmem:[#allocation2 + $0x18] sm:$0xff] %v2196_v0 }
  0x43   : > { %264 = vst [vmem:[#allocation2 + $0x50] sm:$0xff] %v2196_v0  ;;  %265 = vst [vmem:[#allocation2 + $0x68] sm:$0xff] %v2196_v0 }
  0x44   : > { %266 = vst [vmem:[#allocation2 + $0x30] sm:$0xff] %v2196_v0  ;;  %267 = vst [vmem:[#allocation2 + $0x48] sm:$0xff] %v2196_v0 }
  0x45   : > { %268 = vst [vmem:[#allocation2 + $0x80] sm:$0xff] %v2196_v0  ;;  %269 = vst [vmem:[#allocation2 + $0x88] sm:$0xff] %v2196_v0 }
  0x46   : > { %270 = vst [vmem:[#allocation2 + $0xe8] sm:$0xff] %v2196_v0  ;;  %271 = vst [vmem:[#allocation2 + $0xb8] sm:$0xff] %v2196_v0 }
  0x47   : > { %272 = vst [vmem:[#allocation2 + $0x60] sm:$0xff] %v2196_v0  ;;  %273 = vst [vmem:[#allocation2 + $0xf0] sm:$0xff] %v2196_v0 }
  0x48   : > { %274 = vst [vmem:[#allocation2 + $0x8] sm:$0xff] %v2196_v0  ;;  %275 = vst [vmem:[#allocation2 + $0x78] sm:$0xff] %v2196_v0 }
  0x49   : > { %276 = vst [vmem:[#allocation2 + $0x38] sm:$0xff] %v2196_v0  ;;  %277 = vst [vmem:[#allocation2 + $0x58] sm:$0xff] %v2196_v0 }
  0x4a   : > { %278 = vst [vmem:[#allocation2 + $0x40] sm:$0xff] %v2196_v0  ;;  %279 = vst [vmem:[#allocation2 + $0xc8] sm:$0xff] %v2196_v0 }
  0x4b   : > { %280 = vst [vmem:[#allocation2 + $0xe0] sm:$0xff] %v2196_v0  ;;  %281 = vst [vmem:[#allocation2 + $0x90] sm:$0xff] %v2196_v0 }
  0x4c   : > { %282 = vst [vmem:[#allocation2 + $0x70] sm:$0xff] %v2196_v0  ;;  %283 = vst [vmem:[#allocation2 + $0xc0] sm:$0xff] %v2196_v0 }
  0x4d   : > { %284 = vst [vmem:[#allocation2 + $0xa8] sm:$0xff] %v2196_v0  ;;  %285 = vst [vmem:[#allocation2 + $0xd0] sm:$0xff] %v2196_v0 }
  0x4e   : > { %286 = vst [vmem:[#allocation2 + $0x10] sm:$0xff] %v2196_v0  ;;  %287 = vst [vmem:[#allocation2 + $0x28] sm:$0xff] %v2196_v0 }
  0x4f   : > { %288 = vst [vmem:[#allocation2 + $0xa0] sm:$0xff] %v2196_v0  ;;  %289 = vst [vmem:[#allocation2 + $0xf8] sm:$0xff] %v2196_v0 }
  0x50   : > { %290 = vst [vmem:[#allocation2 + $0x20] sm:$0xff] %v2196_v0  ;;  %291 = vst [vmem:[#allocation2 + $0x98] sm:$0xff] %v2196_v0 }
  0x51 PF: > { %s292_s30 = sshra.s32 %s2174_s25, 7  ;;  %s297_s9 = sand.u32 127, %s2174_s25 }
  0x52   : > { %s294_s13 = sadd.s32 %s2178_s26, %s292_s30 }
  0x53   : > { %s1680_s16 = sshll.u32 %s294_s13, 7 }
  0x54   : > { %s298_s17 = sadd.s32 %s1680_s16, %s297_s9 }
  0x55   : > { %s299_s18 = sld [smem:[#allocation4 + %s298_s17]] }
  0x5b   : > { %p1681_p4 = scmp.le.s32.totalorder %s299_s18, 0 }
  0x5c   : > { %s1723_s12 = sshll.u32 (!%p1681_p4), %s2174_s25, 6 }
  0x5d   : > { %303 = sbr.rel (%p1681_p4) target bundleno = 636 (0x27c), region = 48  ;;  %s2358_s6 = scalar_lea.vmem (!%p1681_p4), %s2927_s3, %s1723_s12 }
  0x62   : > { %v1966_v1 = vld [vmem:[%s2338_s19] sm:$0xff]   ;;  %v1958_v2 = vld [vmem:[%s2358_s6 + $0x38] sm:$0xff]   ;;  %v1959_v3 = vld [vmem:[%s2358_s6 + $0x30] sm:$0xff]   ;;  %v336_v7 = vlaneseq  ;;  %v338_v10 = vstv %s2174_s25  ;;  %vm372_vm1 = vcmask 31744  }
  0x63   : > { %1790 = vmatprep.mubr.bf16.mxu0 %v1966_v1  ;;  %1774 = vmatprep.subr.bf16.mxu0 %v1958_v2  ;;  %v1960_v4 = vld [vmem:[%s2358_s6 + $0x28] sm:$0xff]   ;;  %v1961_v5 = vld [vmem:[%s2358_s6 + $0x20] sm:$0xff]   ;;  %v1962_v6 = vld [vmem:[%s2358_s6 + $0x18] sm:$0xff]  }
  0x64   : > { %1775 = vmatpush3.bf16.msra.mxu0 %v1958_v2  ;;  %v1963_v8 = vld [vmem:[%s2358_s6 + $0x10] sm:$0xff]   ;;  %v337_v9 = vand.u32 127, %v336_v7  ;;  %v1964_v11 = vld [vmem:[%s2358_s6 + $0x8] sm:$0xff]   ;;  %v304_v13 = vld [vmem:[%s2343_s14] sm:$0xff] }
  0x65   : > { %1776 = vmatprep.subr.bf16.mxu0 %v1959_v3  ;;  %v306_v14 = vld [vmem:[%s2343_s14 + $0x10] sm:$0xff]  ;;  %v305_v15 = vld [vmem:[%s2343_s14 + $0x8] sm:$0xff]  ;;  %v307_v19 = vld [vmem:[%s2343_s14 + $0x18] sm:$0xff] }
  0x66   : > { %vm2368_vm0 = vcmp.eq.s32.totalorder %v337_v9, %v338_v10  ;;  %v1965_v20 = vld [vmem:[%s2358_s6] sm:$0xff]   ;;  %v309_v25 = vld [vmem:[%s2343_s14 + $0x28] sm:$0xff]  ;;  %v310_v30 = vld [vmem:[%s2343_s14 + $0x30] sm:$0xff]  ;;  %s1194_s6 = scalar_lea.vmem [#allocation5], %s1723_s12 }
  0x67   : > { %v340_v16 = vsel %vm2368_vm0, %v304_v13, 0.0  ;;  %v342_v17 = vsel %vm2368_vm0, %v306_v14, 0.0  ;;  %v341_v18 = vsel %vm2368_vm0, %v305_v15, 0.0  ;;  %v343_v23 = vsel %vm2368_vm0, %v307_v19, 0.0  ;;  %v308_v24 = vld [vmem:[%s2343_s14 + $0x20] sm:$0xff]  ;;  %v311_v31 = vld [vmem:[%s2343_s14 + $0x38] sm:$0xff] }
  0x68   : > { %1777 = vmatpush3.bf16.msra.mxu0 %v1959_v3  ;;  %v373_v21 = vsel %vm372_vm1, %v340_v16, 0.0  ;;  %v379_v22 = vsel %vm372_vm1, %v342_v17, 0.0  ;;  %v376_v26 = vsel %vm372_vm1, %v341_v18, 0.0  ;;  %v382_v27 = vsel %vm372_vm1, %v343_v23, 0.0  ;;  %v1967_v32 = vld [vmem:[%s2338_s19 + $0x8] sm:$0xff]   ;;  %v1968_v35 = vld [vmem:[%s2338_s19 + $0x10] sm:$0xff]  }
  0x69   : > { %1778 = vmatprep.subr.bf16.mxu0 %v1960_v4  ;;  %374 = vadd.xlane.f32.xlu0 %v373_v21  ;;  %v344_v28 = vsel %vm2368_vm0, %v308_v24, 0.0  ;;  %v345_v29 = vsel %vm2368_vm0, %v309_v25, 0.0  ;;  %v346_v36 = vsel %vm2368_vm0, %v310_v30, 0.0  ;;  %v347_v37 = vsel %vm2368_vm0, %v311_v31, 0.0  ;;  %v312_v38 = vld [vmem:[%s2343_s14 + $0x40] sm:$0xff]  ;;  %v313_v39 = vld [vmem:[%s2343_s14 + $0x48] sm:$0xff] }
  0x6a   : > { %380 = vadd.xlane.f32.xlu1 %v379_v22  ;;  %v385_v33 = vsel %vm372_vm1, %v344_v28, 0.0  ;;  %v388_v34 = vsel %vm372_vm1, %v345_v29, 0.0  ;;  %v391_v40 = vsel %vm372_vm1, %v346_v36, 0.0  ;;  %v394_v41 = vsel %vm372_vm1, %v347_v37, 0.0  ;;  %v314_v44 = vld [vmem:[%s2343_s14 + $0x50] sm:$0xff]  ;;  %v315_v45 = vld [vmem:[%s2343_s14 + $0x58] sm:$0xff] }
  0x6b   : > { %v348_v42 = vsel %vm2368_vm0, %v312_v38, 0.0  ;;  %v349_v43 = vsel %vm2368_vm0, %v313_v39, 0.0  ;;  %v1969_v46 = vld [vmem:[%s2338_s19 + $0x18] sm:$0xff]   ;;  %v1970_v49 = vld [vmem:[%s2338_s19 + $0x20] sm:$0xff]   ;;  %v350_v50 = vsel %vm2368_vm0, %v314_v44, 0.0  ;;  %v351_v51 = vsel %vm2368_vm0, %v315_v45, 0.0 }
  0x6c   : > { %1779 = vmatpush3.bf16.msra.mxu0 %v1960_v4  ;;  %v397_v47 = vsel %vm372_vm1, %v348_v42, 0.0  ;;  %v400_v48 = vsel %vm372_vm1, %v349_v43, 0.0  ;;  %v316_v52 = vld [vmem:[%s2343_s14 + $0x60] sm:$0xff]  ;;  %v317_v53 = vld [vmem:[%s2343_s14 + $0x68] sm:$0xff]  ;;  %v403_v54 = vsel %vm372_vm1, %v350_v50, 0.0  ;;  %v406_v55 = vsel %vm372_vm1, %v351_v51, 0.0 }
  0x6d   : > { %1780 = vmatprep.subr.bf16.mxu0 %v1961_v5  ;;  %377 = vadd.xlane.f32.xlu0 %v376_v26  ;;  %v352_v56 = vsel %vm2368_vm0, %v316_v52, 0.0  ;;  %v353_v57 = vsel %vm2368_vm0, %v317_v53, 0.0  ;;  %v318_v58 = vld [vmem:[%s2343_s14 + $0x70] sm:$0xff]  ;;  %v319_v59 = vld [vmem:[%s2343_s14 + $0x78] sm:$0xff]  ;;  %v1971_v60 = vld [vmem:[%s2338_s19 + $0x28] sm:$0xff]  }
  0x6e   : > { %383 = vadd.xlane.f32.xlu1 %v382_v27  ;;  %v409_v61 = vsel %vm372_vm1, %v352_v56, 0.0  ;;  %v412_v62 = vsel %vm372_vm1, %v353_v57, 0.0  ;;  %v1972_v63 = vld [vmem:[%s2338_s19 + $0x30] sm:$0xff]   ;;  %v354_v0 = vsel %vm2368_vm0, %v318_v58, 0.0  ;;  %v355_v1 = vsel %vm2368_vm0, %v319_v59, 0.0  ;;  %v320_v2 = vld [vmem:[%s2343_s14 + $0x80] sm:$0xff] }
  0x6f   : > { %v321_v3 = vld [vmem:[%s2343_s14 + $0x88] sm:$0xff]  ;;  %v415_v4 = vsel %vm372_vm1, %v354_v0, 0.0  ;;  %v323_v9 = vld [vmem:[%s2343_s14 + $0x98] sm:$0xff]  ;;  %v1974_v14 = vld [vmem:[%s2338_s19 + $0x40] sm:$0xff]  }
  0x70   : > { %1781 = vmatpush3.bf16.msra.mxu0 %v1961_v5  ;;  %v418_v5 = vsel %vm372_vm1, %v355_v1, 0.0  ;;  %v357_v7 = vsel %vm2368_vm0, %v321_v3, 0.0  ;;  %v1973_v10 = vld [vmem:[%s2338_s19 + $0x38] sm:$0xff]   ;;  %v359_v16 = vsel %vm2368_vm0, %v323_v9, 0.0  ;;  %v324_v17 = vld [vmem:[%s2343_s14 + $0xa0] sm:$0xff]  ;;  %v325_v18 = vld [vmem:[%s2343_s14 + $0xa8] sm:$0xff] }
  0x71   : > { %1782 = vmatprep.subr.bf16.mxu0 %v1962_v6  ;;  %386 = vadd.xlane.f32.xlu0 %v385_v33  ;;  %v424_v13 = vsel %vm372_vm1, %v357_v7, 0.0  ;;  %v360_v21 = vsel %vm2368_vm0, %v324_v17, 0.0  ;;  %v361_v22 = vsel %vm2368_vm0, %v325_v18, 0.0  ;;  %v326_v23 = vld [vmem:[%s2343_s14 + $0xb0] sm:$0xff]  ;;  %v327_v24 = vld [vmem:[%s2343_s14 + $0xb8] sm:$0xff]  ;;  %v1975_v25 = vld [vmem:[%s2338_s19 + $0x48] sm:$0xff]  }
  0x72   : > { %389 = vadd.xlane.f32.xlu1 %v388_v34  ;;  %v433_v26 = vsel %vm372_vm1, %v360_v21, 0.0  ;;  %v436_v27 = vsel %vm372_vm1, %v361_v22, 0.0  ;;  %v1976_v28 = vld [vmem:[%s2338_s19 + $0x50] sm:$0xff]   ;;  %v362_v29 = vsel %vm2368_vm0, %v326_v23, 0.0  ;;  %v363_v30 = vsel %vm2368_vm0, %v327_v24, 0.0  ;;  %v328_v31 = vld [vmem:[%s2343_s14 + $0xc0] sm:$0xff] }
  0x73   : > { %v439_v33 = vsel %vm372_vm1, %v362_v29, 0.0  ;;  %v442_v34 = vsel %vm372_vm1, %v363_v30, 0.0  ;;  %v330_v37 = vld [vmem:[%s2343_s14 + $0xd0] sm:$0xff]  ;;  %v331_v38 = vld [vmem:[%s2343_s14 + $0xd8] sm:$0xff]  ;;  %v1978_v42 = vld [vmem:[%s2338_s19 + $0x60] sm:$0xff]  }
  0x74   : > { %1783 = vmatpush3.bf16.msra.mxu0 %v1962_v6  ;;  %v356_v6 = vsel %vm2368_vm0, %v320_v2, 0.0  ;;  %v1977_v39 = vld [vmem:[%s2338_s19 + $0x58] sm:$0xff]   ;;  %v366_v43 = vsel %vm2368_vm0, %v330_v37, 0.0  ;;  %v367_v44 = vsel %vm2368_vm0, %v331_v38, 0.0  ;;  %v332_v45 = vld [vmem:[%s2343_s14 + $0xe0] sm:$0xff]  ;;  %v334_v51 = vld [vmem:[%s2343_s14 + $0xf0] sm:$0xff] }
  0x75   : > { %1784 = vmatprep.subr.bf16.mxu0 %v1963_v8  ;;  %392 = vadd.xlane.f32.xlu0 %v391_v40  ;;  %v335_v52 = vld [vmem:[%s2343_s14 + $0xf8] sm:$0xff]  ;;  %v1979_v53 = vld [vmem:[%s2338_s19 + $0x68] sm:$0xff]   ;;  %v1980_v56 = vld [vmem:[%s2338_s19 + $0x70] sm:$0xff]   ;;  %v370_v57 = vsel %vm2368_vm0, %v334_v51, 0.0 }
  0x76   : > { %395 = vadd.xlane.f32.xlu1 %v394_v41  ;;  %v371_v58 = vsel %vm2368_vm0, %v335_v52, 0.0  ;;  %v463_v59 = vsel %vm372_vm1, %v370_v57, 0.0  ;;  %v1984_v12 = vld [vmem:[%s1194_s6 + $0x28] sm:$0xff]   ;;  %v1985_v0 = vld [vmem:[%s1194_s6 + $0x20] sm:$0xff]   ;;  %v1986_v1 = vld [vmem:[%s1194_s6 + $0x18] sm:$0xff]  }
  0x77   : > { %v1987_v2 = vld [vmem:[%s1194_s6 + $0x10] sm:$0xff]   ;;  %v1988_v3 = vld [vmem:[%s1194_s6 + $0x8] sm:$0xff]  }
  0x78   : > { %1785 = vmatpush3.bf16.msra.mxu0 %v1963_v8  ;;  %v322_v8 = vld [vmem:[%s2343_s14 + $0x90] sm:$0xff] }
  0x79   : > { %1786 = vmatprep.subr.bf16.mxu0 %v1964_v11  ;;  %398 = vadd.xlane.f32.xlu0 %v397_v47  ;;  %v358_v15 = vsel %vm2368_vm0, %v322_v8, 0.0  ;;  %v451_v47 = vsel %vm372_vm1, %v366_v43, 0.0 }
  0x7a   : > { %401 = vadd.xlane.f32.xlu1 %v400_v48  ;;  %v427_v19 = vsel %vm372_vm1, %v358_v15, 0.0  ;;  %v454_v48 = vsel %vm372_vm1, %v367_v44, 0.0 }
  0x7c   : > { %1787 = vmatpush3.bf16.msra.mxu0 %v1964_v11  ;;  %v421_v11 = vsel %vm372_vm1, %v356_v6, 0.0 }
  0x7d   : > { %1788 = vmatprep.subr.bf16.mxu0 %v1965_v20  ;;  %404 = vadd.xlane.f32.xlu0 %v403_v54 }
  0x7e   : > { %407 = vadd.xlane.f32.xlu1 %v406_v55 }
  0x80   : > { %1789 = vmatpush3.bf16.msra.mxu0 %v1965_v20  ;;  %v430_v20 = vsel %vm372_vm1, %v359_v16, 0.0 }
  0x81   : > { %410 = vadd.xlane.f32.xlu0 %v409_v61  ;;  %v1981_v61 = vld [vmem:[%s2338_s19 + $0x78] sm:$0xff]  }
  0x82   : > { %413 = vadd.xlane.f32.xlu1 %v412_v62  ;;  %v1982_v62 = vld [vmem:[%s1194_s6 + $0x38] sm:$0xff]  }
  0x83   : > { %1791 = vmatmul.mubr.bf16.vlgmr.msra.gmra.mxu0 %v1967_v32  ;;  %v329_v32 = vld [vmem:[%s2343_s14 + $0xc8] sm:$0xff]  ;;  %1822 = vmatprep.subr.bf16.mxu1 %v1982_v62 }
  0x84   : > { %1794 = vmatprep.mubr.bf16.mxu0 %v1968_v35  ;;  %v364_v35 = vsel %vm2368_vm0, %v328_v31, 0.0  ;;  %v365_v36 = vsel %vm2368_vm0, %v329_v32, 0.0  ;;  %1823 = vmatpush3.bf16.msra.mxu1 %v1982_v62 }
  0x85   : > { %416 = vadd.xlane.f32.xlu0 %v415_v4  ;;  %v445_v40 = vsel %vm372_vm1, %v364_v35, 0.0  ;;  %v448_v41 = vsel %vm372_vm1, %v365_v36, 0.0  ;;  %v1989_v4 = vld [vmem:[%s1194_s6] sm:$0xff]  }
  0x86   : > { %419 = vadd.xlane.f32.xlu1 %v418_v5 }
  0x89   : > { %422 = vadd.xlane.f32.xlu0 %v421_v11 }
  0x8a   : > { %425 = vadd.xlane.f32.xlu1 %v424_v13 }
  0x8b   : > { %1795 = vmatmul.mubr.bf16.gmra.mxu0 %v1969_v46  ;;  %v333_v46 = vld [vmem:[%s2343_s14 + $0xe8] sm:$0xff] }
  0x8c   : > { %1798 = vmatprep.mubr.bf16.mxu0 %v1970_v49  ;;  %v368_v49 = vsel %vm2368_vm0, %v332_v45, 0.0  ;;  %v369_v50 = vsel %vm2368_vm0, %v333_v46, 0.0 }
  0x8d   : > { %428 = vadd.xlane.f32.xlu0 %v427_v19  ;;  %v457_v54 = vsel %vm372_vm1, %v368_v49, 0.0  ;;  %v460_v55 = vsel %vm372_vm1, %v369_v50, 0.0 }
  0x8e   : > { %431 = vadd.xlane.f32.xlu1 %v430_v20 }
  0x91   : > { %434 = vadd.xlane.f32.xlu0 %v433_v26 }
  0x92   : > { %437 = vadd.xlane.f32.xlu1 %v436_v27 }
  0x93   : > { %1799 = vmatmul.mubr.bf16.gmra.mxu0 %v1971_v60  ;;  %v466_v60 = vsel %vm372_vm1, %v371_v58, 0.0 }
  0x94   : > { %1802 = vmatprep.mubr.bf16.mxu0 %v1972_v63  ;;  %v1983_v63 = vld [vmem:[%s1194_s6 + $0x30] sm:$0xff]  }
  0x95   : > { %440 = vadd.xlane.f32.xlu0 %v439_v33  ;;  %1824 = vmatprep.subr.bf16.mxu1 %v1983_v63 }
  0x96   : > { %443 = vadd.xlane.f32.xlu1 %v442_v34  ;;  %1825 = vmatpush3.bf16.msra.mxu1 %v1983_v63 }
  0x97   : > { %1826 = vmatprep.subr.bf16.mxu1 %v1984_v12 }
  0x99   : > { %446 = vadd.xlane.f32.xlu0 %v445_v40 }
  0x9a   : > { %449 = vadd.xlane.f32.xlu1 %v448_v41  ;;  %1827 = vmatpush3.bf16.msra.mxu1 %v1984_v12 }
  0x9b   : > { %1803 = vmatmul.mubr.bf16.gmra.mxu0 %v1973_v10  ;;  %1828 = vmatprep.subr.bf16.mxu1 %v1985_v0 }
  0x9c   : > { %1806 = vmatprep.mubr.bf16.mxu0 %v1974_v14 }
  0x9d   : > { %452 = vadd.xlane.f32.xlu0 %v451_v47 }
  0x9e   : > { %455 = vadd.xlane.f32.xlu1 %v454_v48  ;;  %1829 = vmatpush3.bf16.msra.mxu1 %v1985_v0 }
  0x9f   : > { %1830 = vmatprep.subr.bf16.mxu1 %v1986_v1 }
  0xa1   : > { %458 = vadd.xlane.f32.xlu0 %v457_v54 }
  0xa2   : > { %461 = vadd.xlane.f32.xlu1 %v460_v55  ;;  %1831 = vmatpush3.bf16.msra.mxu1 %v1986_v1 }
  0xa3   : > { %1807 = vmatmul.mubr.bf16.gmra.mxu0 %v1975_v25  ;;  %1832 = vmatprep.subr.bf16.mxu1 %v1987_v2 }
  0xa4   : > { %1810 = vmatprep.mubr.bf16.mxu0 %v1976_v28 }
  0xa5   : > { %464 = vadd.xlane.f32.xlu0 %v463_v59 }
  0xa6   : > { %467 = vadd.xlane.f32.xlu1 %v466_v60  ;;  %1833 = vmatpush3.bf16.msra.mxu1 %v1987_v2 }
  0xa7   : > { %1834 = vmatprep.subr.bf16.mxu1 %v1988_v3 }
  0xaa   : > { %1835 = vmatpush3.bf16.msra.mxu1 %v1988_v3 }
  0xab   : > { %1811 = vmatmul.mubr.bf16.gmra.mxu0 %v1977_v39  ;;  %1836 = vmatprep.subr.bf16.mxu1 %v1989_v4 }
  0xac   : > { %1814 = vmatprep.mubr.bf16.mxu0 %v1978_v42 }
  0xae   : > { %1837 = vmatpush3.bf16.msra.mxu1 %v1989_v4 }
  0xb3   : > { %1815 = vmatmul.mubr.bf16.gmra.mxu0 %v1979_v53 }
  0xb4   : > { %1818 = vmatprep.mubr.bf16.mxu0 %v1980_v56 }
  0xbb   : > { %1819 = vmatmul.mubr.bf16.gmra.mxu0 %v1981_v61 }
  0xf2   : > { %v2560_v39 = vpop.xlane.xlu0 %374 }
  0xf3   : > { %v2552_v33 = vpop.xlane.xlu1 %380 }
  0xf6   : > { %v2582_v60 = vpop.xlane.xlu0 %377 }
  0xf7   : > { %v2574_v52 = vpop.xlane.xlu1 %383 }
 0x143   : > { %v2518_v5 = vpop.f32.mrf.mxu0 }
 0x144   : > { %v827_v6 = vmul.f32 %v2518_v5, %v2518_v5 }
 0x145   : > { %v2522_v7 = vpop.f32.mrf.mxu0 }
 0x146   : > { %v859_v8 = vmul.f32 %v2518_v5, %v827_v6  ;;  %v825_v9 = vmul.f32 %v2522_v7, %v2522_v7 }
 0x147   : > { %v2527_v10 = vpop.f32.mrf.mxu0 }
 0x148   : > { %v891_v11 = vmul.f32 0.044715, %v859_v8  ;;  %v857_v13 = vmul.f32 %v825_v9, %v2522_v7  ;;  %v828_v14 = vmul.f32 %v2527_v10, %v2527_v10 }
 0x149   : > { %v2532_v15 = vpop.f32.mrf.mxu0 }
 0x14a   : > { %v923_v16 = vadd.f32 %v2518_v5, %v891_v11  ;;  %v889_v17 = vmul.f32 0.044715, %v857_v13  ;;  %v860_v18 = vmul.f32 %v2527_v10, %v828_v14  ;;  %v826_v19 = vmul.f32 %v2532_v15, %v2532_v15  ;;  %v2596_v13 = vpop.xlane.xlu1 %389 }
 0x14b   : > { %v2538_v20 = vpop.f32.mrf.mxu0 }
 0x14c   : > { %v955_v21 = vmul.f32 0.7978846, %v923_v16  ;;  %v921_v22 = vadd.f32 %v889_v17, %v2522_v7  ;;  %v892_v23 = vmul.f32 0.044715, %v860_v18  ;;  %v858_v24 = vmul.f32 %v826_v19, %v2532_v15 }
 0x14d   : > { %v831_v25 = vmul.f32 %v2538_v20, %v2538_v20  ;;  %v2544_v26 = vpop.f32.mrf.mxu0 }
 0x14e   : > { %1990 = vtanh.f32 %v955_v21  ;;  %v953_v27 = vmul.f32 0.7978846, %v921_v22  ;;  %v890_v28 = vmul.f32 0.044715, %v858_v24  ;;  %v924_v29 = vadd.f32 %v2527_v10, %v892_v23  ;;  %v2604_v24 = vpop.xlane.xlu0 %386 }
 0x14f   : > { %v863_v30 = vmul.f32 %v2538_v20, %v831_v25  ;;  %v829_v31 = vmul.f32 %v2544_v26, %v2544_v26  ;;  %v2550_v32 = vpop.f32.mrf.mxu0 }
 0x150   : > { %1992 = vtanh.f32 %v953_v27  ;;  %v922_v34 = vadd.f32 %v890_v28, %v2532_v15  ;;  %v832_v35 = vmul.f32 %v2550_v32, %v2550_v32  ;;  %v956_v43 = vmul.f32 0.7978846, %v924_v29 }
 0x151   : > { %v895_v36 = vmul.f32 0.044715, %v863_v30  ;;  %v861_v37 = vmul.f32 %v829_v31, %v2544_v26  ;;  %v2558_v38 = vpop.f32.mrf.mxu0 }
 0x152   : > { %v954_v40 = vmul.f32 0.7978846, %v922_v34  ;;  %v864_v41 = vmul.f32 %v2550_v32, %v832_v35  ;;  %v830_v42 = vmul.f32 %v2558_v38, %v2558_v38 }
 0x153   : > { %v927_v44 = vadd.f32 %v2538_v20, %v895_v36  ;;  %v893_v45 = vmul.f32 0.044715, %v861_v37  ;;  %v2566_v46 = vpop.f32.mrf.mxu0 }
 0x154   : > { %v896_v47 = vmul.f32 0.044715, %v864_v41  ;;  %v862_v48 = vmul.f32 %v830_v42, %v2558_v38  ;;  %v835_v49 = vmul.f32 %v2566_v46, %v2566_v46  ;;  %1994 = vtanh.f32 %v954_v40 }
 0x155   : > { %v925_v50 = vadd.f32 %v893_v45, %v2544_v26  ;;  %v2572_v51 = vpop.f32.mrf.mxu0  ;;  %1996 = vtanh.f32 %v956_v43  ;;  %v959_v57 = vmul.f32 0.7978846, %v927_v44 }
 0x156   : > { %v928_v53 = vadd.f32 %v2550_v32, %v896_v47  ;;  %v894_v54 = vmul.f32 0.044715, %v862_v48  ;;  %v867_v55 = vmul.f32 %v2566_v46, %v835_v49  ;;  %v833_v56 = vmul.f32 %v2572_v51, %v2572_v51  ;;  %v2619_v47 = vpop.xlane.xlu1 %395 }
 0x157   : > { %v957_v58 = vmul.f32 0.7978846, %v925_v50  ;;  %v2580_v59 = vpop.f32.mrf.mxu0 }
 0x158   : > { %v960_v61 = vmul.f32 0.7978846, %v928_v53  ;;  %v926_v62 = vadd.f32 %v894_v54, %v2558_v38  ;;  %v899_v63 = vmul.f32 0.044715, %v867_v55  ;;  %v865_v12 = vmul.f32 %v833_v56, %v2572_v51 }
 0x159   : > { %1998 = vtanh.f32 %v957_v58  ;;  %v836_v0 = vmul.f32 %v2580_v59, %v2580_v59  ;;  %v2588_v1 = vpop.f32.mrf.mxu0 }
 0x15a   : > { %v958_v2 = vmul.f32 0.7978846, %v926_v62  ;;  %v931_v3 = vadd.f32 %v2566_v46, %v899_v63  ;;  %v897_v4 = vmul.f32 0.044715, %v865_v12  ;;  %2000 = vtanh.f32 %v959_v57 }
 0x15b   : > { %v1991_v6 = vpop.eup %1990  ;;  %v868_v8 = vmul.f32 %v2580_v59, %v836_v0  ;;  %v834_v9 = vmul.f32 %v2588_v1, %v2588_v1  ;;  %v2594_v11 = vpop.f32.mrf.mxu0  ;;  %2002 = vtanh.f32 %v960_v61 }
 0x15c   : > { %v963_v14 = vmul.f32 0.7978846, %v931_v3  ;;  %v929_v16 = vadd.f32 %v897_v4, %v2572_v51  ;;  %v839_v17 = vmul.f32 %v2594_v11, %v2594_v11  ;;  %2004 = vtanh.f32 %v958_v2 }
 0x15d   : > { %v1993_v18 = vpop.eup %1992  ;;  %v900_v19 = vmul.f32 0.044715, %v868_v8  ;;  %v866_v21 = vmul.f32 %v834_v9, %v2588_v1  ;;  %v2602_v22 = vpop.f32.mrf.mxu0  ;;  %v1019_v23 = vadd.f32 1.0, %v1991_v6 }
 0x15e   : > { %2006 = vtanh.f32 %v963_v14  ;;  %v961_v25 = vmul.f32 0.7978846, %v929_v16  ;;  %v871_v27 = vmul.f32 %v2594_v11, %v839_v17  ;;  %v837_v28 = vmul.f32 %v2602_v22, %v2602_v22 }
 0x15f   : > { %v932_v29 = vadd.f32 %v2580_v59, %v900_v19  ;;  %v898_v30 = vmul.f32 0.044715, %v866_v21  ;;  %v1017_v31 = vadd.f32 1.0, %v1993_v18  ;;  %v2610_v34 = vpop.f32.mrf.mxu0  ;;  %v1051_v35 = vmul.f32 0.5, %v1019_v23  ;;  %v2648_v19 = vpop.xlane.xlu1 %401 }
 0x160   : > { %2008 = vtanh.f32 %v961_v25  ;;  %v903_v36 = vmul.f32 0.044715, %v871_v27  ;;  %v869_v37 = vmul.f32 %v837_v28, %v2602_v22  ;;  %v840_v40 = vmul.f32 %v2610_v34, %v2610_v34 }
 0x161   : > { %v964_v41 = vmul.f32 0.7978846, %v932_v29  ;;  %v930_v42 = vadd.f32 %v898_v30, %v2588_v1  ;;  %v1049_v43 = vmul.f32 0.5, %v1017_v31  ;;  %v2616_v44 = vpop.f32.mrf.mxu0  ;;  %v1083_v45 = vmul.f32 %v2518_v5, %v1051_v35  ;;  %v1995_v48 = vpop.eup %1994 }
 0x162   : > { %v935_v49 = vadd.f32 %v2594_v11, %v903_v36  ;;  %v901_v50 = vmul.f32 0.044715, %v869_v37  ;;  %v872_v53 = vmul.f32 %v2610_v34, %v840_v40  ;;  %v838_v54 = vmul.f32 %v2616_v44, %v2616_v44  ;;  %v2631_v5 = vpop.xlane.xlu0 %392  ;;  %v1997_v61 = vpop.eup %1996 }
 0x163   : > { %2010 = vtanh.f32 %v964_v41  ;;  %v962_v55 = vmul.f32 0.7978846, %v930_v42  ;;  %v1081_v56 = vmul.f32 %v1049_v43, %v2522_v7  ;;  %v2627_v57 = vmul.f32 %v1083_v45, %v2552_v33  ;;  %v2629_v58 = vpop.f32.mrf.mxu0 }
 0x164   : > { %v967_v62 = vmul.f32 0.7978846, %v935_v49  ;;  %v933_v63 = vadd.f32 %v901_v50, %v2602_v22  ;;  %v904_v12 = vmul.f32 0.044715, %v872_v53  ;;  %v870_v0 = vmul.f32 %v838_v54, %v2616_v44 }
 0x165   : > { %2012 = vtanh.f32 %v962_v55  ;;  %v2636_v2 = vmul.f32 %v1081_v56, %v2560_v39  ;;  %v1018_v3 = vadd.f32 1.0, %v1995_v48  ;;  %v843_v7 = vmul.f32 %v2629_v58, %v2629_v58  ;;  %v2640_v33 = vpop.f32.mrf.mxu0 }
 0x166   : > { %v1999_v4 = vpop.eup %1998  ;;  %2014 = vtanh.f32 %v967_v62  ;;  %v965_v6 = vmul.f32 0.7978846, %v933_v63  ;;  %v936_v8 = vadd.f32 %v2610_v34, %v904_v12  ;;  %v902_v9 = vmul.f32 0.044715, %v870_v0  ;;  %v2655_v37 = vpop.xlane.xlu0 %398 }
 0x167   : > { %v1050_v14 = vmul.f32 0.5, %v1018_v3  ;;  %v875_v16 = vmul.f32 %v2629_v58, %v843_v7  ;;  %v841_v17 = vmul.f32 %v2640_v33, %v2640_v33  ;;  %v1020_v39 = vadd.f32 1.0, %v1997_v61  ;;  %v2646_v18 = vpop.f32.mrf.mxu0  ;;  %v2001_v21 = vpop.eup %2000 }
 0x168   : > { %2016 = vtanh.f32 %v965_v6  ;;  %v968_v23 = vmul.f32 0.7978846, %v936_v8  ;;  %v934_v25 = vadd.f32 %v902_v9, %v2616_v44  ;;  %v1021_v27 = vadd.f32 1.0, %v1999_v4  ;;  %v2003_v28 = vpop.eup %2002 }
 0x169   : > { %v1082_v29 = vmul.f32 %v1050_v14, %v2532_v15  ;;  %v907_v30 = vmul.f32 0.044715, %v875_v16  ;;  %v873_v31 = vmul.f32 %v841_v17, %v2640_v33  ;;  %v1052_v35 = vmul.f32 0.5, %v1020_v39  ;;  %v2653_v36 = vpop.f32.mrf.mxu0  ;;  %v2005_v40 = vpop.eup %2004 }
 0x16a   : > { %2018 = vtanh.f32 %v968_v23  ;;  %v966_v41 = vmul.f32 0.7978846, %v934_v25  ;;  %v1053_v42 = vmul.f32 0.5, %v1021_v27  ;;  %v844_v43 = vmul.f32 %v2646_v18, %v2646_v18  ;;  %v2681_v16 = vpop.xlane.xlu0 %404 }
 0x16b   : > { %v2659_v45 = vpop.eup %2006  ;;  %v1114_v48 = vmul.f32 %v1082_v29, %v2582_v60  ;;  %v939_v15 = vadd.f32 %v2629_v58, %v907_v30  ;;  %v905_v49 = vmul.f32 0.044715, %v873_v31  ;;  %v1084_v50 = vmul.f32 %v2527_v10, %v1052_v35  ;;  %v2664_v53 = vpop.f32.mrf.mxu0 }
 0x16c   : > { %2020 = vtanh.f32 %v966_v41  ;;  %v1085_v54 = vmul.f32 %v1053_v42, %v2544_v26  ;;  %v876_v55 = vmul.f32 %v2646_v18, %v844_v43  ;;  %v842_v56 = vmul.f32 %v2653_v36, %v2653_v36  ;;  %v2674_v10 = vpop.xlane.xlu1 %407 }
 0x16d   : > { %v2009_v61 = vpop.eup %2008  ;;  %v971_v62 = vmul.f32 0.7978846, %v939_v15  ;;  %v937_v63 = vadd.f32 %v905_v49, %v2640_v33  ;;  %v1116_v60 = vmul.f32 %v1084_v50, %v2574_v52  ;;  %v1022_v12 = vadd.f32 1.0, %v2005_v40  ;;  %v2672_v0 = vpop.f32.mrf.mxu0 }
 0x16e   : > { %v1117_v3 = vmul.f32 %v1085_v54, %v2604_v24  ;;  %v908_v7 = vmul.f32 0.044715, %v876_v55  ;;  %v874_v26 = vmul.f32 %v842_v56, %v2653_v36  ;;  %v1023_v4 = vadd.f32 1.0, %v2001_v21 }
 0x16f   : > { %2022 = vtanh.f32 %v971_v62  ;;  %v969_v6 = vmul.f32 0.7978846, %v937_v63  ;;  %v1146_v8 = vpack.c.bf16 %v1116_v60, %v2627_v57  ;;  %v1054_v9 = vmul.f32 0.5, %v1022_v12  ;;  %v2679_v14 = vpop.f32.mrf.mxu0  ;;  %v2708_v60 = vpop.xlane.xlu0 %410 }
 0x170   : > { %v2683_v52 = vpop.eup %2010  ;;  %v940_v17 = vadd.f32 %v2646_v18, %v908_v7  ;;  %v906_v39 = vmul.f32 0.044715, %v874_v26  ;;  %v1055_v23 = vmul.f32 0.5, %v1023_v4  ;;  %v847_v24 = vmul.f32 %v2664_v53, %v2664_v53  ;;  %v2703_v15 = vpop.xlane.xlu1 %413 }
 0x171   : > { %2024 = vtanh.f32 %v969_v6  ;;  %v1086_v21 = vmul.f32 %v1054_v9, %v2558_v38  ;;  %v1145_v25 = vpack.c.bf16 %v1114_v48, %v2636_v2  ;;  %v845_v57 = vmul.f32 %v2672_v0, %v2672_v0  ;;  %v2692_v27 = vpop.f32.mrf.mxu0 }
 0x172   : > { %v2013_v29 = vpop.eup %2012  ;;  %v972_v30 = vmul.f32 0.7978846, %v940_v17  ;;  %v938_v31 = vadd.f32 %v906_v39, %v2653_v36  ;;  %v1087_v35 = vmul.f32 %v2538_v20, %v1055_v23  ;;  %v879_v40 = vmul.f32 %v2664_v53, %v847_v24 }
 0x173   : > { %v2697_v41 = vpop.eup %2014  ;;  %v1118_v42 = vmul.f32 %v1086_v21, %v2596_v13  ;;  %1838 = vmatprep.mubr.bf16.mxu1 %v1145_v25  ;;  %v877_v38 = vmul.f32 %v845_v57, %v2672_v0  ;;  %v1024_v2 = vadd.f32 1.0, %v2003_v28  ;;  %v1025_v43 = vadd.f32 1.0, %v2009_v61  ;;  %v2701_v48 = vpop.f32.mrf.mxu0 }
 0x174   : > { %2026 = vtanh.f32 %v972_v30  ;;  %v970_v49 = vmul.f32 0.7978846, %v938_v31  ;;  %v1119_v50 = vmul.f32 %v1087_v35, %v2631_v5  ;;  %v911_v20 = vmul.f32 0.044715, %v879_v40  ;;  %1839 = vmatmul.mubr.bf16.vlgmr.msra.gmra.mxu1 %v1146_v8 }
 0x175   : > { %v2017_v54 = vpop.eup %2016  ;;  %v1147_v55 = vpack.c.bf16 %v1118_v42, %v1117_v3  ;;  %v909_v56 = vmul.f32 0.044715, %v877_v38  ;;  %v1056_v62 = vmul.f32 0.5, %v1024_v2  ;;  %v1057_v13 = vmul.f32 0.5, %v1025_v43  ;;  %v2706_v63 = vpop.f32.mrf.mxu0 }
 0x176   : > { %2028 = vtanh.f32 %v970_v49  ;;  %v943_v28 = vadd.f32 %v2664_v53, %v911_v20  ;;  %v848_v61 = vmul.f32 %v2679_v14, %v2679_v14  ;;  %v846_v5 = vmul.f32 %v2692_v27, %v2692_v27  ;;  %v2734_v42 = vpop.xlane.xlu0 %416 }
 0x177   : > { %v2715_v12 = vpop.eup %2018  ;;  %v941_v3 = vadd.f32 %v909_v56, %v2672_v0  ;;  %v1088_v7 = vmul.f32 %v2550_v32, %v1056_v62  ;;  %v1089_v26 = vmul.f32 %v1057_v13, %v2572_v51  ;;  %v1026_v4 = vadd.f32 1.0, %v2013_v29  ;;  %1842 = vmatprep.mubr.bf16.mxu1 %v1147_v55  ;;  %v2720_v6 = vpop.f32.mrf.mxu0 }
 0x178   : > { %v975_v8 = vmul.f32 0.7978846, %v943_v28  ;;  %v880_v9 = vmul.f32 %v2679_v14, %v848_v61  ;;  %v878_v17 = vmul.f32 %v846_v5, %v2692_v27  ;;  %v1027_v39 = vadd.f32 1.0, %v2659_v45  ;;  %v2729_v51 = vpop.xlane.xlu1 %419 }
 0x179   : > { %v2021_v23 = vpop.eup %2020  ;;  %v973_v24 = vmul.f32 0.7978846, %v941_v3  ;;  %v1120_v21 = vmul.f32 %v1088_v7, %v2619_v47  ;;  %v1121_v25 = vmul.f32 %v1089_v26, %v2655_v37  ;;  %v1058_v32 = vmul.f32 0.5, %v1026_v4  ;;  %v2727_v57 = vpop.f32.mrf.mxu0 }
 0x17a   : > { %2030 = vtanh.f32 %v975_v8  ;;  %v912_v29 = vmul.f32 0.044715, %v880_v9  ;;  %v910_v30 = vmul.f32 0.044715, %v878_v17  ;;  %v1059_v31 = vmul.f32 0.5, %v1027_v39  ;;  %v2765_v39 = vpop.xlane.xlu0 %422 }
 0x17b   : > { %2032 = vtanh.f32 %v973_v24  ;;  %v1148_v35 = vpack.c.bf16 %v1120_v21, %v1119_v50  ;;  %v1090_v40 = vmul.f32 %v1058_v32, %v2588_v1  ;;  %v851_v45 = vmul.f32 %v2701_v48, %v2701_v48  ;;  %v2746_v55 = vpop.f32.mrf.mxu0 }
 0x17c   : > { %v2736_v47 = vpop.eup %2022  ;;  %v944_v37 = vadd.f32 %v2679_v14, %v912_v29  ;;  %v942_v38 = vadd.f32 %v910_v30, %v2692_v27  ;;  %v1091_v2 = vmul.f32 %v2566_v46, %v1059_v31  ;;  %v849_v43 = vmul.f32 %v2706_v63, %v2706_v63  ;;  %v2752_v7 = vpop.xlane.xlu1 %425 }
 0x17d   : > { %v1122_v49 = vmul.f32 %v1090_v40, %v2648_v19  ;;  %v883_v1 = vmul.f32 %v2701_v48, %v851_v45  ;;  %v1028_v50 = vadd.f32 1.0, %v2683_v52  ;;  %1843 = vmatmul.mubr.bf16.gmra.mxu1 %v1148_v35  ;;  %v1029_v20 = vadd.f32 1.0, %v2017_v54  ;;  %v2763_v17 = vpop.f32.mrf.mxu0 }
 0x17e   : > { %v2748_v56 = vpop.eup %2024  ;;  %v976_v62 = vmul.f32 0.7978846, %v944_v37  ;;  %v974_v13 = vmul.f32 0.7978846, %v942_v38  ;;  %v1123_v28 = vmul.f32 %v1091_v2, %v2681_v16  ;;  %v881_v46 = vmul.f32 %v849_v43, %v2706_v63 }
 0x17f   : > { %v1149_v61 = vpack.c.bf16 %v1122_v49, %v1121_v25  ;;  %v915_v5 = vmul.f32 0.044715, %v883_v1  ;;  %v1060_v3 = vmul.f32 0.5, %v1028_v50  ;;  %v1061_v19 = vmul.f32 0.5, %v1029_v20  ;;  %v2775_v49 = vpop.f32.mrf.mxu0 }
 0x180   : > { %2034 = vtanh.f32 %v976_v62  ;;  %v913_v52 = vmul.f32 0.044715, %v881_v46  ;;  %v852_v54 = vmul.f32 %v2720_v6, %v2720_v6  ;;  %v850_v26 = vmul.f32 %v2727_v57, %v2727_v57 }
 0x181   : > { %v2758_v4 = vpop.eup %2026  ;;  %2036 = vtanh.f32 %v974_v13  ;;  %v947_v16 = vadd.f32 %v2701_v48, %v915_v5  ;;  %v1092_v8 = vmul.f32 %v2580_v59, %v1060_v3  ;;  %v1093_v9 = vmul.f32 %v1061_v19, %v2602_v22  ;;  %1846 = vmatprep.mubr.bf16.mxu1 %v1149_v61 }
 0x182   : > { %v945_v24 = vadd.f32 %v913_v52, %v2706_v63  ;;  %v884_v21 = vmul.f32 %v2720_v6, %v852_v54  ;;  %v882_v25 = vmul.f32 %v850_v26, %v2727_v57  ;;  %v1030_v32 = vadd.f32 1.0, %v2021_v23  ;;  %v2777_v23 = vpop.xlane.xlu1 %431  ;;  %v2794_v26 = vpop.f32.mrf.mxu0 }
 0x183   : > { %v2029_v29 = vpop.eup %2028  ;;  %v979_v30 = vmul.f32 0.7978846, %v947_v16  ;;  %v1124_v31 = vmul.f32 %v1092_v8, %v2674_v10  ;;  %v1125_v59 = vmul.f32 %v1093_v9, %v2708_v60  ;;  %v1031_v22 = vadd.f32 1.0, %v2697_v41 }
 0x184   : > { %v977_v35 = vmul.f32 0.7978846, %v945_v24  ;;  %v916_v40 = vmul.f32 0.044715, %v884_v21  ;;  %v914_v45 = vmul.f32 0.044715, %v882_v25  ;;  %v855_v37 = vmul.f32 %v2746_v55, %v2746_v55 }
 0x185   : > { %2038 = vtanh.f32 %v979_v30  ;;  %v1150_v38 = vpack.c.bf16 %v1124_v31, %v1123_v28  ;;  %v1062_v2 = vmul.f32 0.5, %v1030_v32  ;;  %v1063_v43 = vmul.f32 0.5, %v1031_v22  ;;  %v429_v28 = vpop.xlane.xlu0 %428 }
 0x186   : > { %2040 = vtanh.f32 %v977_v35  ;;  %v948_v10 = vadd.f32 %v2720_v6, %v916_v40  ;;  %v946_v60 = vadd.f32 %v914_v45, %v2727_v57  ;;  %v887_v41 = vmul.f32 %v2746_v55, %v855_v37 }
 0x187   : > { %v2782_v1 = vpop.eup %2030  ;;  %v1094_v50 = vmul.f32 %v1062_v2, %v2616_v44  ;;  %v1095_v20 = vmul.f32 %v2594_v11, %v1063_v43  ;;  %v853_v62 = vmul.f32 %v2763_v17, %v2763_v17  ;;  %v1032_v13 = vadd.f32 1.0, %v2715_v12  ;;  %1847 = vmatmul.mubr.bf16.gmra.mxu1 %v1150_v38 }
 0x188   : > { %v2033_v46 = vpop.eup %2032  ;;  %v980_v61 = vmul.f32 0.7978846, %v948_v10  ;;  %v978_v5 = vmul.f32 0.7978846, %v946_v60  ;;  %v919_v3 = vmul.f32 0.044715, %v887_v41  ;;  %v856_v19 = vmul.f32 %v2775_v49, %v2775_v49 }
 0x189   : > { %v1126_v52 = vmul.f32 %v1094_v50, %v2703_v15  ;;  %v1127_v44 = vmul.f32 %v1095_v20, %v2734_v42  ;;  %v885_v11 = vmul.f32 %v853_v62, %v2763_v17  ;;  %v1064_v54 = vmul.f32 0.5, %v1032_v13  ;;  %v438_v15 = vpop.xlane.xlu1 %437 }
 0x18a   : > { %2042 = vtanh.f32 %v980_v61  ;;  %v951_v12 = vadd.f32 %v2746_v55, %v919_v3  ;;  %v1033_v16 = vadd.f32 1.0, %v2748_v56  ;;  %v888_v8 = vmul.f32 %v2775_v49, %v856_v19 }
 0x18b   : > { %2044 = vtanh.f32 %v978_v5  ;;  %v1151_v9 = vpack.c.bf16 %v1126_v52, %v1125_v59  ;;  %v917_v24 = vmul.f32 0.044715, %v885_v11  ;;  %v1096_v21 = vmul.f32 %v2610_v34, %v1064_v54  ;;  %v435_v59 = vpop.xlane.xlu0 %434 }
 0x18c   : > { %v983_v25 = vmul.f32 0.7978846, %v951_v12  ;;  %v1065_v42 = vmul.f32 0.5, %v1033_v16  ;;  %v920_v32 = vmul.f32 0.044715, %v888_v8  ;;  %v854_v30 = vmul.f32 %v2794_v26, %v2794_v26 }
 0x18d   : > { %v2035_v31 = vpop.eup %2034  ;;  %v949_v22 = vadd.f32 %v917_v24, %v2763_v17  ;;  %v1128_v35 = vmul.f32 %v1096_v21, %v2729_v51  ;;  %v1034_v56 = vadd.f32 1.0, %v2029_v29  ;;  %v1035_v40 = vadd.f32 1.0, %v2736_v47  ;;  %1850 = vmatprep.mubr.bf16.mxu1 %v1151_v9  ;;  %v444_v62 = vpop.xlane.xlu1 %443 }
 0x18e   : > { %v2037_v45 = vpop.eup %2036  ;;  %2046 = vtanh.f32 %v983_v25  ;;  %v1097_v34 = vmul.f32 %v1065_v42, %v2640_v33  ;;  %v952_v37 = vadd.f32 %v2775_v49, %v920_v32  ;;  %v886_v38 = vmul.f32 %v854_v30, %v2794_v26 }
 0x18f   : > { %v981_v2 = vmul.f32 0.7978846, %v949_v22  ;;  %v1152_v43 = vpack.c.bf16 %v1128_v35, %v1127_v44  ;;  %v1066_v10 = vmul.f32 0.5, %v1034_v56  ;;  %v1067_v60 = vmul.f32 0.5, %v1035_v40  ;;  %v441_v11 = vpop.xlane.xlu0 %440 }
 0x190   : > { %v1129_v41 = vmul.f32 %v1097_v34, %v2765_v39  ;;  %v984_v51 = vmul.f32 0.7978846, %v952_v37  ;;  %v918_v29 = vmul.f32 0.044715, %v886_v38  ;;  %v1036_v47 = vadd.f32 1.0, %v2758_v4 }
 0x191   : > { %2048 = vtanh.f32 %v981_v2  ;;  %v1098_v50 = vmul.f32 %v1066_v10, %v2653_v36  ;;  %v1099_v20 = vmul.f32 %v2629_v58, %v1067_v60  ;;  %1851 = vmatmul.mubr.bf16.gmra.mxu1 %v1152_v43  ;;  %v1037_v33 = vadd.f32 1.0, %v2033_v46  ;;  %v450_v42 = vpop.xlane.xlu1 %449 }
 0x192   : > { %v2039_v13 = vpop.eup %2038  ;;  %2050 = vtanh.f32 %v984_v51  ;;  %v950_v61 = vadd.f32 %v918_v29, %v2794_v26  ;;  %v1068_v5 = vmul.f32 0.5, %v1036_v47  ;;  %v1038_v3 = vadd.f32 1.0, %v2037_v45 }
 0x193   : > { %v2041_v19 = vpop.eup %2040  ;;  %v1130_v39 = vmul.f32 %v1098_v50, %v2752_v7  ;;  %v1131_v52 = vmul.f32 %v1099_v20, %v429_v28  ;;  %v1069_v44 = vmul.f32 0.5, %v1037_v33  ;;  %v1039_v4 = vadd.f32 1.0, %v2782_v1 }
 0x194   : > { %v982_v36 = vmul.f32 0.7978846, %v950_v61  ;;  %v1100_v58 = vmul.f32 %v2646_v18, %v1068_v5  ;;  %v1070_v54 = vmul.f32 0.5, %v1038_v3  ;;  %v1040_v46 = vadd.f32 1.0, %v2035_v31 }
 0x195   : > { %v1153_v12 = vpack.c.bf16 %v1130_v39, %v1129_v41  ;;  %v1101_v16 = vmul.f32 %v1069_v44, %v2672_v0  ;;  %v1071_v8 = vmul.f32 0.5, %v1039_v4  ;;  %v1041_v9 = vadd.f32 1.0, %v2041_v19  ;;  %v447_v0 = vpop.xlane.xlu0 %446 }
 0x196   : > { %2052 = vtanh.f32 %v982_v36  ;;  %v1132_v24 = vmul.f32 %v1100_v58, %v2777_v23  ;;  %v1102_v7 = vmul.f32 %v1070_v54, %v2692_v27  ;;  %v1072_v28 = vmul.f32 0.5, %v1040_v46 }
 0x197   : > { %v2043_v21 = vpop.eup %2042  ;;  %v1133_v25 = vmul.f32 %v1101_v16, %v435_v59  ;;  %1854 = vmatprep.mubr.bf16.mxu1 %v1153_v12  ;;  %v1073_v1 = vmul.f32 0.5, %v1041_v9  ;;  %v1103_v40 = vmul.f32 %v2664_v53, %v1071_v8  ;;  %v1043_v23 = vadd.f32 1.0, %v2039_v13 }
 0x198   : > { %v2045_v32 = vpop.eup %2044  ;;  %v1154_v18 = vpack.c.bf16 %v1132_v24, %v1131_v52  ;;  %v1134_v30 = vmul.f32 %v1102_v7, %v438_v15  ;;  %v1104_v31 = vmul.f32 %v2679_v14, %v1072_v28  ;;  %v1044_v22 = vadd.f32 1.0, %v2043_v21  ;;  %v456_v15 = vpop.xlane.xlu1 %455  ;;  %v1161_v28 = vld [vmem:[#allocation2 + $0xb0] sm:$0xff] }
 0x199   : > { %v1042_v35 = vadd.f32 1.0, %v2045_v32  ;;  %v1105_v45 = vmul.f32 %v1073_v1, %v2706_v63  ;;  %v1135_v14 = vmul.f32 %v1103_v40, %v441_v11  ;;  %v1075_v43 = vmul.f32 0.5, %v1043_v23  ;;  %v453_v51 = vpop.xlane.xlu0 %452 }
 0x19a   : > { %v1155_v56 = vpack.c.bf16 %v1134_v30, %v1133_v25  ;;  %1855 = vmatmul.mubr.bf16.gmra.mxu1 %v1154_v18  ;;  %v1136_v34 = vmul.f32 %v1104_v31, %v444_v62  ;;  %v1076_v37 = vmul.f32 0.5, %v1044_v22  ;;  %v1164_v25 = vld [vmem:[#allocation2 + $0x18] sm:$0xff]  ;;  %v1167_v30 = vld [vmem:[#allocation2 + $0x30] sm:$0xff] }
 0x19b   : > { %v2047_v27 = vpop.eup %2046  ;;  %v1074_v59 = vmul.f32 0.5, %v1042_v35  ;;  %v1137_v60 = vmul.f32 %v1105_v45, %v447_v0  ;;  %v1107_v20 = vmul.f32 %v2701_v48, %v1075_v43  ;;  %v1165_v22 = vld [vmem:[#allocation2 + $0x50] sm:$0xff]  ;;  %v1172_v43 = vld [vmem:[#allocation2 + $0xb8] sm:$0xff] }
 0x19c   : > { %1858 = vmatprep.mubr.bf16.mxu1 %v1155_v56  ;;  %v1156_v29 = vpack.c.bf16 %v1136_v34, %v1135_v14  ;;  %v1108_v47 = vmul.f32 %v2720_v6, %v1076_v37  ;;  %v1047_v62 = vadd.f32 1.0, %v2047_v27  ;;  %v462_v13 = vpop.xlane.xlu1 %461  ;;  %v1168_v56 = vld [vmem:[#allocation2 + $0x48] sm:$0xff] }
 0x19d   : > { %v1106_v38 = vmul.f32 %v1074_v59, %v2727_v57  ;;  %v459_v19 = vpop.xlane.xlu0 %458  ;;  %v1139_v39 = vmul.f32 %v1107_v20, %v453_v51  ;;  %v1166_v27 = vld [vmem:[#allocation2 + $0x68] sm:$0xff] }
 0x19e   : > { %v2049_v2 = vpop.eup %2048  ;;  %v1140_v61 = vmul.f32 %v1108_v47, %v456_v15  ;;  %v1079_v4 = vmul.f32 0.5, %v1047_v62  ;;  %v1171_v37 = vld [vmem:[#allocation2 + $0xe8] sm:$0xff]  ;;  %v1169_v15 = vld [vmem:[#allocation2 + $0x80] sm:$0xff]  ;;  %v1176_v62 = vld [vmem:[#allocation2 + $0x78] sm:$0xff] }
 0x19f   : > { %v2051_v10 = vpop.eup %2050  ;;  %v1138_v41 = vmul.f32 %v1106_v38, %v450_v42  ;;  %v1045_v53 = vadd.f32 1.0, %v2049_v2  ;;  %v1162_v42 = vld [vmem:[#allocation2] sm:$0xff]  ;;  %v1175_v47 = vld [vmem:[#allocation2 + $0x8] sm:$0xff] }
 0x1a0   : > { %v1048_v50 = vadd.f32 1.0, %v2051_v10  ;;  %v1158_v6 = vpack.c.bf16 %v1140_v61, %v1139_v39  ;;  %v468_v36 = vpop.xlane.xlu1 %467  ;;  %v1111_v46 = vmul.f32 %v2746_v55, %v1079_v4  ;;  %v1174_v61 = vld [vmem:[#allocation2 + $0xf0] sm:$0xff]  ;;  %v1179_v39 = vld [vmem:[#allocation2 + $0x40] sm:$0xff] }
 0x1a1   : > { %v1157_v63 = vpack.c.bf16 %v1138_v41, %v1137_v60  ;;  %v1077_v33 = vmul.f32 0.5, %v1045_v53  ;;  %v465_v12 = vpop.xlane.xlu0 %464  ;;  %v1170_v41 = vld [vmem:[#allocation2 + $0x88] sm:$0xff] }
 0x1a2   : > { %1859 = vmatmul.mubr.bf16.gmra.mxu1 %v1156_v29  ;;  %v1080_v3 = vmul.f32 0.5, %v1048_v50  ;;  %v1143_v9 = vmul.f32 %v1111_v46, %v465_v12  ;;  %v1183_v12 = vld [vmem:[#allocation2 + $0x70] sm:$0xff] }
 0x1a3   : > { %v2053_v57 = vpop.eup %2052  ;;  %1862 = vmatprep.mubr.bf16.mxu1 %v1157_v63  ;;  %v1109_v52 = vmul.f32 %v1077_v33, %v2763_v17  ;;  %v1163_v17 = vld [vmem:[#allocation2 + $0xd8] sm:$0xff]  ;;  %v1173_v63 = vld [vmem:[#allocation2 + $0x60] sm:$0xff] }
 0x1a4   : > { %v1046_v5 = vadd.f32 1.0, %v2053_v57  ;;  %v1112_v48 = vmul.f32 %v2775_v49, %v1080_v3 }
 0x1a5   : > { %v1141_v58 = vmul.f32 %v1109_v52, %v459_v19 }
 0x1a6   : > { %v1078_v44 = vmul.f32 0.5, %v1046_v5  ;;  %v1144_v8 = vmul.f32 %v1112_v48, %v468_v36 }
 0x1a8   : > { %v1110_v11 = vmul.f32 %v1078_v44, %v2794_v26  ;;  %v1160_v24 = vpack.c.bf16 %v1144_v8, %v1143_v9  ;;  %v1177_v44 = vld [vmem:[#allocation2 + $0x38] sm:$0xff]  ;;  %v1181_v9 = vld [vmem:[#allocation2 + $0xe0] sm:$0xff] }
 0x1aa   : > { %v1142_v54 = vmul.f32 %v1110_v11, %v462_v13  ;;  %1863 = vmatmul.mubr.bf16.gmra.mxu1 %v1158_v6  ;;  %v1180_v11 = vld [vmem:[#allocation2 + $0xc8] sm:$0xff] }
 0x1ac   : > { %v1159_v16 = vpack.c.bf16 %v1142_v54, %v1141_v58  ;;  %v1178_v58 = vld [vmem:[#allocation2 + $0x58] sm:$0xff] }
 0x1ae   : > { %1866 = vmatprep.mubr.bf16.mxu1 %v1159_v16 }
 0x1b2   : > { %1867 = vmatmul.mubr.bf16.gmra.mxu1 %v1160_v24 }
 0x234   : > { %v1840_v7 = vpop.f32.mrf.mxu1 }
 0x235   : > { %v1422_v21 = vadd.f32 %v1840_v7, %v1163_v17  ;;  %v1184_v7 = vld [vmem:[#allocation2 + $0xc0] sm:$0xff] }
 0x236   : > { %v1293_v26 = vpop.f32.mrf.mxu1 }
 0x237   : > { %1454 = vst [vmem:[#allocation2 + $0xd8] sm:$0xff] %v1422_v21  ;;  %v1420_v49 = vadd.f32 %v1293_v26, %v1161_v28  ;;  %v1182_v26 = vld [vmem:[#allocation2 + $0x90] sm:$0xff] }
 0x238   : > { %v1841_v1 = vpop.f32.mrf.mxu1 }
 0x239   : > { %1452 = vst [vmem:[#allocation2 + $0xb0] sm:$0xff] %v1420_v49  ;;  %v1423_v55 = vadd.f32 %v1841_v1, %v1164_v25  ;;  %v1187_v1 = vld [vmem:[#allocation2 + $0x10] sm:$0xff] }
 0x23a   : > { %v1296_v32 = vpop.f32.mrf.mxu1 }
 0x23b   : > { %1455 = vst [vmem:[#allocation2 + $0x18] sm:$0xff] %v1423_v55  ;;  %v1421_v18 = vadd.f32 %v1296_v32, %v1162_v42  ;;  %v1185_v32 = vld [vmem:[#allocation2 + $0xa8] sm:$0xff] }
 0x23d   : > { %1453 = vst [vmem:[#allocation2] sm:$0xff] %v1421_v18  ;;  %v1844_v31 = vpop.f32.mrf.mxu1 }
 0x23e   : > { %v1426_v0 = vadd.f32 %v1844_v31, %v1167_v30  ;;  %v1188_v31 = vld [vmem:[#allocation2 + $0x28] sm:$0xff] }
 0x23f   : > { %v1309_v35 = vpop.f32.mrf.mxu1 }
 0x240   : > { %1458 = vst [vmem:[#allocation2 + $0x30] sm:$0xff] %v1426_v0  ;;  %v1424_v40 = vadd.f32 %v1309_v35, %v1165_v22  ;;  %v1186_v35 = vld [vmem:[#allocation2 + $0xd0] sm:$0xff] }
 0x241   : > { %v1845_v23 = vpop.f32.mrf.mxu1 }
 0x242   : > { %1456 = vst [vmem:[#allocation2 + $0x50] sm:$0xff] %v1424_v40  ;;  %v1427_v45 = vadd.f32 %v1845_v23, %v1168_v56  ;;  %v1191_v23 = vld [vmem:[#allocation2 + $0x20] sm:$0xff] }
 0x243   : > { %v1312_v59 = vpop.f32.mrf.mxu1 }
 0x244   : > { %1459 = vst [vmem:[#allocation2 + $0x48] sm:$0xff] %v1427_v45  ;;  %v1425_v34 = vadd.f32 %v1312_v59, %v1166_v27  ;;  %v1189_v59 = vld [vmem:[#allocation2 + $0xa0] sm:$0xff] }
 0x246   : > { %1457 = vst [vmem:[#allocation2 + $0x68] sm:$0xff] %v1425_v34 }
 0x247   : > { %v1848_v38 = vpop.f32.mrf.mxu1 }
 0x248   : > { %v1430_v2 = vadd.f32 %v1848_v38, %v1171_v37  ;;  %v1192_v38 = vld [vmem:[#allocation2 + $0x98] sm:$0xff] }
 0x249   : > { %v1325_v14 = vpop.f32.mrf.mxu1 }
 0x24a   : > { %1462 = vst [vmem:[#allocation2 + $0xe8] sm:$0xff] %v1430_v2  ;;  %v1428_v10 = vadd.f32 %v1325_v14, %v1169_v15  ;;  %v1190_v14 = vld [vmem:[#allocation2 + $0xf8] sm:$0xff] }
 0x24b   : > { %v1849_v60 = vpop.f32.mrf.mxu1 }
 0x24c   : > { %1460 = vst [vmem:[#allocation2 + $0x80] sm:$0xff] %v1428_v10  ;;  %v1431_v51 = vadd.f32 %v1849_v60, %v1172_v43 }
 0x24d   : > { %v1328_v53 = vpop.f32.mrf.mxu1 }
 0x24e   : > { %1463 = vst [vmem:[#allocation2 + $0xb8] sm:$0xff] %v1431_v51  ;;  %v1429_v29 = vadd.f32 %v1328_v53, %v1170_v41 }
 0x250   : > { %1461 = vst [vmem:[#allocation2 + $0x88] sm:$0xff] %v1429_v29 }
 0x251   : > { %v1852_v50 = vpop.f32.mrf.mxu1 }
 0x252   : > { %v1434_v20 = vadd.f32 %v1852_v50, %v1175_v47 }
 0x253   : > { %v1341_v33 = vpop.f32.mrf.mxu1 }
 0x254   : > { %1466 = vst [vmem:[#allocation2 + $0x8] sm:$0xff] %v1434_v20  ;;  %v1432_v57 = vadd.f32 %v1341_v33, %v1173_v63 }
 0x255   : > { %v1853_v13 = vpop.f32.mrf.mxu1 }
 0x256   : > { %1464 = vst [vmem:[#allocation2 + $0x60] sm:$0xff] %v1432_v57  ;;  %v1435_v5 = vadd.f32 %v1853_v13, %v1176_v62 }
 0x257   : > { %v1344_v3 = vpop.f32.mrf.mxu1 }
 0x258   : > { %1467 = vst [vmem:[#allocation2 + $0x78] sm:$0xff] %v1435_v5  ;;  %v1433_v19 = vadd.f32 %v1344_v3, %v1174_v61 }
 0x25a   : > { %1465 = vst [vmem:[#allocation2 + $0xf0] sm:$0xff] %v1433_v19  ;;  %v1856_v52 = vpop.f32.mrf.mxu1 }
 0x25b   : > { %v1438_v4 = vadd.f32 %v1856_v52, %v1179_v39 }
 0x25c   : > { %v1357_v6 = vpop.f32.mrf.mxu1 }
 0x25d   : > { %1470 = vst [vmem:[#allocation2 + $0x40] sm:$0xff] %v1438_v4  ;;  %v1436_v48 = vadd.f32 %v1357_v6, %v1177_v44 }
 0x25e   : > { %v1857_v36 = vpop.f32.mrf.mxu1 }
 0x25f   : > { %1468 = vst [vmem:[#allocation2 + $0x38] sm:$0xff] %v1436_v48  ;;  %v1439_v54 = vadd.f32 %v1857_v36, %v1180_v11 }
 0x260   : > { %v1360_v46 = vpop.f32.mrf.mxu1 }
 0x261   : > { %1471 = vst [vmem:[#allocation2 + $0xc8] sm:$0xff] %v1439_v54  ;;  %v1437_v16 = vadd.f32 %v1360_v46, %v1178_v58 }
 0x262   : > { %v1860_v8 = vpop.f32.mrf.mxu1 }
 0x263   : > { %1469 = vst [vmem:[#allocation2 + $0x58] sm:$0xff] %v1437_v16  ;;  %v1442_v24 = vadd.f32 %v1860_v8, %v1183_v12 }
 0x264   : > { %v1373_v17 = vpop.f32.mrf.mxu1 }
 0x265   : > { %1474 = vst [vmem:[#allocation2 + $0x70] sm:$0xff] %v1442_v24  ;;  %v1440_v28 = vadd.f32 %v1373_v17, %v1181_v9 }
 0x266   : > { %v1861_v21 = vpop.f32.mrf.mxu1 }
 0x267   : > { %1472 = vst [vmem:[#allocation2 + $0xe0] sm:$0xff] %v1440_v28  ;;  %v1443_v25 = vadd.f32 %v1861_v21, %v1184_v7 }
 0x268   : > { %v1376_v49 = vpop.f32.mrf.mxu1 }
 0x269   : > { %1475 = vst [vmem:[#allocation2 + $0xc0] sm:$0xff] %v1443_v25  ;;  %v1441_v42 = vadd.f32 %v1376_v49, %v1182_v26 }
 0x26a   : > { %v1864_v55 = vpop.f32.mrf.mxu1 }
 0x26b   : > { %1473 = vst [vmem:[#allocation2 + $0x90] sm:$0xff] %v1441_v42  ;;  %v1446_v18 = vadd.f32 %v1864_v55, %v1187_v1 }
 0x26c   : > { %v1389_v30 = vpop.f32.mrf.mxu1 }
 0x26d   : > { %1478 = vst [vmem:[#allocation2 + $0x10] sm:$0xff] %v1446_v18  ;;  %v1444_v22 = vadd.f32 %v1389_v30, %v1185_v32 }
 0x26e   : > { %v1865_v0 = vpop.f32.mrf.mxu1 }
 0x26f   : > { %1476 = vst [vmem:[#allocation2 + $0xa8] sm:$0xff] %v1444_v22  ;;  %v1447_v56 = vadd.f32 %v1865_v0, %v1188_v31 }
 0x270   : > { %v1392_v40 = vpop.f32.mrf.mxu1 }
 0x271   : > { %1479 = vst [vmem:[#allocation2 + $0x28] sm:$0xff] %v1447_v56  ;;  %v1445_v27 = vadd.f32 %v1392_v40, %v1186_v35 }
 0x272   : > { %v1868_v45 = vpop.f32.mrf.mxu1 }
 0x273   : > { %1477 = vst [vmem:[#allocation2 + $0xd0] sm:$0xff] %v1445_v27  ;;  %v1450_v34 = vadd.f32 %v1868_v45, %v1191_v23 }
 0x274   : > { %v1405_v37 = vpop.f32.mrf.mxu1 }
 0x275   : > { %1482 = vst [vmem:[#allocation2 + $0x20] sm:$0xff] %v1450_v34  ;;  %v1448_v15 = vadd.f32 %v1405_v37, %v1189_v59 }
 0x276   : > { %v1869_v2 = vpop.f32.mrf.mxu1 }
 0x277   : > { %1480 = vst [vmem:[#allocation2 + $0xa0] sm:$0xff] %v1448_v15  ;;  %v1451_v43 = vadd.f32 %v1869_v2, %v1192_v38 }
 0x278   : > { %v1408_v10 = vpop.f32.mrf.mxu1 }
 0x279   : > { %1483 = vst [vmem:[#allocation2 + $0x98] sm:$0xff] %v1451_v43  ;;  %v1449_v60 = vadd.f32 %v1408_v10, %v1190_v14 }
 0x27b   : > { %1481 = vst [vmem:[#allocation2 + $0xf8] sm:$0xff] %v1449_v60 }
 0x27c PF: > { %p1717_p5 = scmp.ne.s32.totalorder %s2174_s25, 3 }
 0x27e   : > { %1487 = sbr.rel (%p1717_p5) target bundleno = 660 (0x294), region = 52 }
 0x283   : > { %v1488_v41 = vld [vmem:[#allocation2 + $0xb0] sm:$0xff]  ;;  %v1489_v51 = vld [vmem:[#allocation2] sm:$0xff]  ;;  %v1490_v53 = vld [vmem:[#allocation2 + $0xd8] sm:$0xff] }
 0x284   : > { %1520 = vst [vmem:[%s2345_s22] sm:$0xff] %v1488_v41  ;;  %1521 = vst [vmem:[%s2345_s22 + $0x8] sm:$0xff] %v1489_v51  ;;  %v1491_v29 = vld [vmem:[#allocation2 + $0x18] sm:$0xff]  ;;  %v1492_v47 = vld [vmem:[#allocation2 + $0x50] sm:$0xff] }
 0x285   : > { %1522 = vst [vmem:[%s2345_s22 + $0x10] sm:$0xff] %v1490_v53  ;;  %v1493_v50 = vld [vmem:[#allocation2 + $0x68] sm:$0xff]  ;;  %1523 = vst [vmem:[%s2345_s22 + $0x18] sm:$0xff] %v1491_v29  ;;  %v1494_v63 = vld [vmem:[#allocation2 + $0x30] sm:$0xff] }
 0x286   : > { %1524 = vst [vmem:[%s2345_s22 + $0x20] sm:$0xff] %v1492_v47  ;;  %1525 = vst [vmem:[%s2345_s22 + $0x28] sm:$0xff] %v1493_v50  ;;  %v1495_v20 = vld [vmem:[#allocation2 + $0x48] sm:$0xff]  ;;  %v1496_v33 = vld [vmem:[#allocation2 + $0x80] sm:$0xff] }
 0x287   : > { %1526 = vst [vmem:[%s2345_s22 + $0x30] sm:$0xff] %v1494_v63  ;;  %1527 = vst [vmem:[%s2345_s22 + $0x38] sm:$0xff] %v1495_v20  ;;  %v1497_v62 = vld [vmem:[#allocation2 + $0x88] sm:$0xff]  ;;  %v1499_v13 = vld [vmem:[#allocation2 + $0xb8] sm:$0xff] }
 0x288   : > { %1528 = vst [vmem:[%s2345_s22 + $0x40] sm:$0xff] %v1496_v33  ;;  %v1498_v57 = vld [vmem:[#allocation2 + $0xe8] sm:$0xff]  ;;  %1529 = vst [vmem:[%s2345_s22 + $0x48] sm:$0xff] %v1497_v62  ;;  %v1500_v61 = vld [vmem:[#allocation2 + $0x60] sm:$0xff] }
 0x289   : > { %1530 = vst [vmem:[%s2345_s22 + $0x50] sm:$0xff] %v1498_v57  ;;  %1531 = vst [vmem:[%s2345_s22 + $0x58] sm:$0xff] %v1499_v13  ;;  %v1501_v5 = vld [vmem:[#allocation2 + $0xf0] sm:$0xff]  ;;  %v1502_v3 = vld [vmem:[#allocation2 + $0x8] sm:$0xff] }
 0x28a   : > { %1532 = vst [vmem:[%s2345_s22 + $0x60] sm:$0xff] %v1500_v61  ;;  %1533 = vst [vmem:[%s2345_s22 + $0x68] sm:$0xff] %v1501_v5  ;;  %v1503_v19 = vld [vmem:[#allocation2 + $0x78] sm:$0xff]  ;;  %v1506_v44 = vld [vmem:[#allocation2 + $0x40] sm:$0xff] }
 0x28b   : > { %1534 = vst [vmem:[%s2345_s22 + $0x70] sm:$0xff] %v1502_v3  ;;  %v1504_v39 = vld [vmem:[#allocation2 + $0x38] sm:$0xff]  ;;  %1535 = vst [vmem:[%s2345_s22 + $0x78] sm:$0xff] %v1503_v19  ;;  %v1507_v4 = vld [vmem:[#allocation2 + $0xc8] sm:$0xff] }
 0x28c   : > { %v1505_v52 = vld [vmem:[#allocation2 + $0x58] sm:$0xff]  ;;  %1536 = vst [vmem:[%s2345_s22 + $0x80] sm:$0xff] %v1504_v39  ;;  %v1508_v6 = vld [vmem:[#allocation2 + $0xe0] sm:$0xff]  ;;  %1538 = vst [vmem:[%s2345_s22 + $0x90] sm:$0xff] %v1506_v44 }
 0x28d   : > { %1537 = vst [vmem:[%s2345_s22 + $0x88] sm:$0xff] %v1505_v52  ;;  %1539 = vst [vmem:[%s2345_s22 + $0x98] sm:$0xff] %v1507_v4  ;;  %v1509_v11 = vld [vmem:[#allocation2 + $0x90] sm:$0xff]  ;;  %v1511_v36 = vld [vmem:[#allocation2 + $0xc0] sm:$0xff] }
 0x28e   : > { %1540 = vst [vmem:[%s2345_s22 + $0xa0] sm:$0xff] %v1508_v6  ;;  %v1510_v48 = vld [vmem:[#allocation2 + $0x70] sm:$0xff]  ;;  %1541 = vst [vmem:[%s2345_s22 + $0xa8] sm:$0xff] %v1509_v11  ;;  %v1512_v58 = vld [vmem:[#allocation2 + $0xa8] sm:$0xff] }
 0x28f   : > { %1542 = vst [vmem:[%s2345_s22 + $0xb0] sm:$0xff] %v1510_v48  ;;  %1543 = vst [vmem:[%s2345_s22 + $0xb8] sm:$0xff] %v1511_v36  ;;  %v1513_v54 = vld [vmem:[#allocation2 + $0xd0] sm:$0xff]  ;;  %v1515_v12 = vld [vmem:[#allocation2 + $0x28] sm:$0xff] }
 0x290   : > { %v1514_v46 = vld [vmem:[#allocation2 + $0x10] sm:$0xff]  ;;  %1544 = vst [vmem:[%s2345_s22 + $0xc0] sm:$0xff] %v1512_v58  ;;  %1545 = vst [vmem:[%s2345_s22 + $0xc8] sm:$0xff] %v1513_v54  ;;  %v1516_v16 = vld [vmem:[#allocation2 + $0xa0] sm:$0xff] }
 0x291   : > { %1546 = vst [vmem:[%s2345_s22 + $0xd0] sm:$0xff] %v1514_v46  ;;  %v1517_v8 = vld [vmem:[#allocation2 + $0xf8] sm:$0xff]  ;;  %1547 = vst [vmem:[%s2345_s22 + $0xd8] sm:$0xff] %v1515_v12  ;;  %v1518_v9 = vld [vmem:[#allocation2 + $0x20] sm:$0xff] }
 0x292   : > { %1548 = vst [vmem:[%s2345_s22 + $0xe0] sm:$0xff] %v1516_v16  ;;  %1549 = vst [vmem:[%s2345_s22 + $0xe8] sm:$0xff] %v1517_v8  ;;  %v1519_v24 = vld [vmem:[#allocation2 + $0x98] sm:$0xff] }
 0x293   : > { %1550 = vst [vmem:[%s2345_s22 + $0xf0] sm:$0xff] %v1518_v9  ;;  %1551 = vst [vmem:[%s2345_s22 + $0xf8] sm:$0xff] %v1519_v24 }
 0x294 PF: > { %s1725_s25 = sshll.u32 %s2178_s26, 12  ;;  %s1566_s9 = sshll.u32 %s2345_s22, 4  ;;  %s2869_s9 = int_to_ptr.vmem [resolvable:$true] %s1566_s9 }
 0x295   : > { %s2866_s30 = scalar_lea.hbm %s2929_s5, %s1725_s25  ;;  %s2938_s13 = sand.u32 1, %s2166_s24  }
 0x296   : > { %s2873_s16 = scalar_lea.sflag [#allocation7], %s2938_s13  ;;  %s2092_s17 = scalar_lea.vmem %s2869_s9, 4096 }
 0x297   : > { %p2093_p6 = scmp.ne.s32.totalorder %s2869_s9, %s2092_s17  ;;  %s2197_s26 = smov [#allocation8]  }
 0x298   : > { %s2096_s18 = sshll.u32 %s2197_s26, 4  ;;  %s2097_s18 = int_to_ptr.vmem [resolvable:$false] %s2096_s18 }
 0x299   : > { %p2094_p7 = pnand %p2093_p6, %p2283_p8  ;;  %s2098_s12 = scalar_lea.vmem %s2097_s18, 8192 }
 0x29a   : > { %p2099_p10 = scmp.lt.s32.totalorder %s2869_s9, %s2097_s18  ;;  %p2100_p11 = scmp.lt.s32.totalorder %s2098_s12, %s2092_s17 }
 0x29b   : > { %p2095_p9 = pneg %p2094_p7 }
 0x29c   : > { %p2101_p12 = por %p2100_p11, %p2099_p10 }
 0x29e   : > { %p2102_p13 = pnand %p2101_p12, %p2095_p9 }
 0x2a0   : > { %2105 = shalt.err (!%p2102_p13)
}
 0x2a1   : > { %s2106_s22 = scalar_lea.hbm %s2866_s30, 4096  ;;  %s2110_s6 = scalar_lea.hbm %s2929_s5, 8192 }
 0x2a2   : > { %p2107_p2 = scmp.ne.s32.totalorder %s2866_s30, %s2106_s22  ;;  %p2111_p4 = scmp.lt.s32.totalorder %s2866_s30, %s2929_s5 }
 0x2a3   : > { %p2112_p5 = scmp.lt.s32.totalorder %s2110_s6, %s2106_s22 }
 0x2a4   : > { %p2108_p3 = pnand %p2107_p2, %p2283_p8 }
 0x2a5   : > { %p2113_p6 = por %p2112_p5, %p2111_p4 }
 0x2a6   : > { %p2109_p1 = pneg %p2108_p3 }
 0x2a8   : > { %p2114_p7 = pnand %p2113_p6, %p2109_p1 }
 0x2aa   : > { %2117 = shalt.err (!%p2114_p7)
}
 0x2ab   : > { %s2198_s14 = smov 128   ;;  %s2199_s13 = smov 8  }
 0x2ac   : > { %1874 = dma.vmem_to_hbm [thread:$0]  (%p2283_p8), %s2869_s9, 4096, %s2866_s30, %s2873_s16, %s2198_s14, %s2198_s14, %s2199_s13  }
 0x2ad PF: > { %p1886_p9 = scmp.ge.s32.totalorder %s2190_s29, 2  ;;  %s1581_s17 = sand.u32 1, %s2162_s23  }
 0x2ae   : > { %s1582_s26 = scalar_lea.sflag [#allocation7], %s1581_s17 }
 0x2af   : > { %p1881_p10 = pnand %p1886_p9, %p2293_p0 }
 0x2b1   : > { %p1882_p11 = pneg %p1881_p10 }
 0x2b3   : > { %2157 = dma.done.wait (%p1882_p11), %s1582_s26, 4096  }
 0x2b4   : > { %2159 = vsyncadd (%p1882_p11), %s1582_s26, 4294963200  ;;  %s25_s29 = sadd.s32 1, %s2190_s29   ;;  %s2939_s23 = smov %s2166_s24 }
 0x2b5   : > { %p22_p12 = scmp.ge.s32.totalorder %s25_s29, 10   ;;  %s2940_s24 = smov %s2170_s0 }
 0x2b6   : > { %s2941_s0 = smov %s2310_s15  ;;  %s2942_s25 = smov %s2182_s27 }
 0x2b7   : > { %s2943_s26 = smov %s2186_s28  ;;  %s2944_s27 = smov %s2947_s7 }
 0x2b8   : > { %s2945_s28 = smov %s2951_s8  ;;  %24 = sbr.rel (!%p22_p12) target bundleno = 21 (0x15), region = 93 }
 0x2bd   :  { %1587 = vsyncpa [#allocation6], 1 }
 0x2be   :  { %1589 = vsyncpa [#allocation6 + $0x1], 1 }
 0x2bf   :  { %1590 = vsyncpa [#allocation7], 1 }
 0x2c0   :  { %1592 = vsyncpa [#allocation7 + $0x1], 1 }

</bundles_post_ra>
